<compile_context>
chip_gen: v7x
topology: tpu7x:2x2x1
jax: 0.10.0
libtpu: 0.0.40
codegen_flags: <defaults>
</compile_context>

<pallas_src>
import functools
import math

import jax
import jax.numpy as jnp
import numpy as np
from jax.experimental import pallas as pl
from jax.experimental.pallas import tpu as pltpu

BN_EPS = 1e-5
LRELU_SLOPE = 0.05
_K = 4  # every conv in D_B is 4x4


# ----------------------------------------------------------------------------- kernel

def _d_b_kernel(x_ref, rs1_ref, c1_ref,
                rs2_ref, c2_ref, g2_ref, b2_ref, t2_ref, t2t_ref,
                rs3_ref, c3_ref, g3_ref, b3_ref, t3_ref, t3t_ref,
                w4_ref, gsum_ref, o_ref, *, n_out, bn_counts):
    """Whole-network forward; every operand / intermediate stays in VMEM / vregs."""

    def conv(a, rs_ref, c_ref):
        # stride-2 4x4 conv as 4 pairs of plain 2D matmuls (MXU).
        acc = None
        for ki in range(_K):
            t = jnp.dot(a, c_ref[ki], preferred_element_type=jnp.float32)
            t = jnp.dot(rs_ref[ki], t, preferred_element_type=jnp.float32)
            acc = t if acc is None else acc + t
        return acc

    def bn(y, g_ref, b_ref, t_ref, tt_ref, count):
        # PyTorch BatchNorm2d, training mode (biased batch stats), folded to one FMA.
        # Channel c occupies lanes {w*C + c}; T sums / Tt broadcasts those lane groups.
        inv = 1.0 / count
        s1 = jnp.dot(jnp.sum(y, axis=0, keepdims=True), t_ref[...],
                     preferred_element_type=jnp.float32)                   # (1, C)
        s2 = jnp.dot(jnp.sum(y * y, axis=0, keepdims=True), t_ref[...],
                     preferred_element_type=jnp.float32)                   # (1, C)
        mean = s1 * inv
        var = jnp.maximum(s2 * inv - mean * mean, 0.0)
        scale = g_ref[...] * jax.lax.rsqrt(var + BN_EPS)                   # (1, C)
        shift = b_ref[...] - mean * scale
        scale_l = jnp.dot(scale, tt_ref[...], preferred_element_type=jnp.float32)
        shift_l = jnp.dot(shift, tt_ref[...], preferred_element_type=jnp.float32)
        return y * scale_l + shift_l

    def lrelu(y):
        return jnp.maximum(y, LRELU_SLOPE * y)

    h1 = lrelu(conv(x_ref[...], rs1_ref, c1_ref))                          # (N*16, 16*C1)
    h2 = lrelu(bn(conv(h1, rs2_ref, c2_ref), g2_ref, b2_ref,
                  t2_ref, t2t_ref, bn_counts[0]))                          # (N*8, 8*C2)
    h3 = lrelu(bn(conv(h2, rs3_ref, c3_ref), g3_ref, b3_ref,
                  t3_ref, t3t_ref, bn_counts[1]))                          # (N*4, 4*C3)

    # Final layer: 4x4 valid conv on a 4x4 map == full per-image contraction.
    # VPU multiply + lane reduce + tiny group-sum matmul (no MXU pass for 2 scalars).
    cols = []
    for co in range(n_out):
        prod = h3 * w4_ref[co]                                             # (N*4, 4*C3)
        rsum = jnp.sum(prod, axis=1, keepdims=True)                        # (N*4, 1)
        cols.append(jnp.dot(gsum_ref[...], rsum,
                            preferred_element_type=jnp.float32))           # (N, 1)
    o_ref[...] = cols[0] if n_out == 1 else jnp.concatenate(cols, axis=1)


# ----------------------------------------------------------------------------- packing helpers

def _row_select_mats(n, h_out, h_in, stride, pad):
    """(K, N*h_out, N*h_in) 0/1 matrices: pick input row stride*ho+ki-pad per image."""
    mats = np.zeros((_K, n * h_out, n * h_in), np.float32)
    for ki in range(_K):
        for img in range(n):
            for ho in range(h_out):
                h = stride * ho + ki - pad
                if 0 <= h < h_in:
                    mats[ki, img * h_out + ho, img * h_in + h] = 1.0
    return mats


def _col_weight_mats(w, w_out, w_in, stride, pad):
    """Embed conv weights (cout, cin, K, K) into (K, w_in*cin, w_out*cout) matrices
    acting on lane-dense (.., w*cin+ci) slabs; column window + padding are folded in."""
    c_out, c_in = w.shape[0], w.shape[1]
    g = np.zeros((w_in, w_out, _K), np.float32)
    for wp in range(w_in):
        for wo in range(w_out):
            kj = wp + pad - stride * wo
            if 0 <= kj < _K:
                g[wp, wo, kj] = 1.0
    mats = []
    for ki in range(_K):
        c = jnp.einsum('pwj,oij->piwo', g, w[:, :, ki, :])        # (w_in, cin, w_out, cout)
        mats.append(c.reshape(w_in * c_in, w_out * c_out))
    return jnp.stack(mats)


def _bn_group_mats(w_out, c):
    """T sums the w_out lane groups per channel; T^T broadcasts per-channel values back."""
    t = np.tile(np.eye(c, dtype=np.float32), (w_out, 1))          # (w_out*c, c)
    return t, t.T.copy()


# ----------------------------------------------------------------------------- module wrapper

def init_params(key, conv_dim=8, use_labels=False):
    n_out = 11 if use_labels else 1

    def conv_w(key, c_out, c_in, k):
        # PyTorch Conv2d default init scale (kaiming_uniform, a=sqrt(5)).
        fan_in = c_in * k * k
        bound = 1.0 / math.sqrt(fan_in)
        return jax.random.uniform(key, (c_out, c_in, k, k), jnp.float32, -bound, bound)

    k1, k2, k3, k4 = jax.random.split(key, 4)
    return {
        "w1": conv_w(k1, conv_dim, 1, 4),
        "w2": conv_w(k2, conv_dim * 2, conv_dim, 4),
        "g2": jnp.ones((conv_dim * 2,), jnp.float32),
        "b2": jnp.zeros((conv_dim * 2,), jnp.float32),
        "w3": conv_w(k3, conv_dim * 4, conv_dim * 2, 4),
        "g3": jnp.ones((conv_dim * 4,), jnp.float32),
        "b3": jnp.zeros((conv_dim * 4,), jnp.float32),
        "w4": conv_w(k4, n_out, conv_dim * 4, 4),
    }


def d_b_forward(x, params):
    """Equivalent of D_B.forward in training mode (BN uses batch stats).

    Note: unlike torch's .squeeze(), the batch dim is always kept (N == 1 -> shape (1,)),
    per correctness review.
    """
    n, c_in, h, w = x.shape
    assert c_in == 1 and h == 32 and w == 32, "D_B expects (N, 1, 32, 32) inputs"
    c1 = params["w1"].shape[0]
    c2 = params["w2"].shape[0]
    c3 = params["w3"].shape[0]
    n_out = params["w4"].shape[0]
    s1, s2, s3 = 16, 8, 4                       # spatial sizes after each stride-2 conv

    f32 = jnp.float32
    # Lane-dense 2D activation slab: A[(n, h), (w, c)].
    x2d = jnp.transpose(x.astype(f32), (0, 2, 3, 1)).reshape(n * 32, 32 * c_in)

    # Pack structured matrices once at the module boundary (no per-layer HLO transposes,
    # no im2col patch tensors through HBM).
    rs1 = _row_select_mats(n, s1, 32, 2, 1)
    rs2 = _row_select_mats(n, s2, s1, 2, 1)
    rs3 = _row_select_mats(n, s3, s2, 2, 1)
    c1m = _col_weight_mats(params["w1"].astype(f32), s1, 32, 2, 1)   # (4, 32, 128)
    c2m = _col_weight_mats(params["w2"].astype(f32), s2, s1, 2, 1)   # (4, 128, 128)
    c3m = _col_weight_mats(params["w3"].astype(f32), s3, s2, 2, 1)   # (4, 128, 128)
    t2, t2t = _bn_group_mats(s2, c2)
    t3, t3t = _bn_group_mats(s3, c3)
    g2 = params["g2"].astype(f32).reshape(1, c2)
    b2 = params["b2"].astype(f32).reshape(1, c2)
    g3 = params["g3"].astype(f32).reshape(1, c3)
    b3 = params["b3"].astype(f32).reshape(1, c3)
    # Last-layer weights laid out to match h3's (row=(n,h), lane=(w,c)) slab, tiled over N.
    w4f = jnp.transpose(params["w4"].astype(f32), (0, 2, 3, 1)).reshape(n_out, _K, _K * c3)
    w4t = jnp.tile(w4f, (1, n, 1))                                   # (n_out, N*4, 4*C3)
    gsum = np.kron(np.eye(n, dtype=np.float32), np.ones((1, s3), np.float32))  # (N, N*4)

    vmem = pl.BlockSpec(memory_space=pltpu.MemorySpace.VMEM)
    kernel = functools.partial(
        _d_b_kernel, n_out=n_out,
        bn_counts=(float(n * s2 * s2), float(n * s3 * s3)))
    out = pl.pallas_call(
        kernel,
        out_shape=jax.ShapeDtypeStruct((n, n_out), jnp.float32),
        in_specs=[vmem] * 17,
        out_specs=vmem,
    )(x2d, rs1, c1m, rs2, c2m, g2, b2, t2, t2t, rs3, c3m, g3, b3, t3, t3t, w4t, gsum)

    return out[:, 0] if n_out == 1 else out


if __name__ == "__main__":
    key = jax.random.PRNGKey(0)
    k_params, k_x = jax.random.split(key)

    conv_dim = 8                        # small conv_dim (module default is 64)
    params = init_params(k_params, conv_dim=conv_dim, use_labels=False)

    # MNIST-style input for this discriminator: 32x32 single-channel, NCHW.
    x = jax.random.normal(k_x, (2, 1, 32, 32), jnp.float32)

    out = jax.jit(d_b_forward)(x, params)
    jax.block_until_ready(out)
    assert out.shape == (2,), out.shape
    print("KERNEL_OK")
</pallas_src>

<mosaic_0001>
module attributes {stable_mosaic.version = 11 : i64} {
  func.func @_d_b_kernel(%arg0: memref<64x32xf32, #tpu.memory_space<vmem>>, %arg1: memref<4x32x64xf32, #tpu.memory_space<vmem>>, %arg2: memref<4x32x128xf32, #tpu.memory_space<vmem>>, %arg3: memref<4x16x32xf32, #tpu.memory_space<vmem>>, %arg4: memref<4x128x128xf32, #tpu.memory_space<vmem>>, %arg5: memref<1x16xf32, #tpu.memory_space<vmem>>, %arg6: memref<1x16xf32, #tpu.memory_space<vmem>>, %arg7: memref<128x16xf32, #tpu.memory_space<vmem>>, %arg8: memref<16x128xf32, #tpu.memory_space<vmem>>, %arg9: memref<4x8x16xf32, #tpu.memory_space<vmem>>, %arg10: memref<4x128x128xf32, #tpu.memory_space<vmem>>, %arg11: memref<1x32xf32, #tpu.memory_space<vmem>>, %arg12: memref<1x32xf32, #tpu.memory_space<vmem>>, %arg13: memref<128x32xf32, #tpu.memory_space<vmem>>, %arg14: memref<32x128xf32, #tpu.memory_space<vmem>>, %arg15: memref<1x8x128xf32, #tpu.memory_space<vmem>>, %arg16: memref<2x8xf32, #tpu.memory_space<vmem>>, %arg17: memref<2x1xf32, #tpu.memory_space<vmem>>) attributes {dimension_semantics = [], scalar_prefetch = 0 : i64, scratch_operands = 0 : i64, tpu.core_type = #tpu.core_type<tc>} {
    %c0 = arith.constant 0 : index
    %c0_0 = arith.constant 0 : index
    %0 = vector.load %arg0[%c0, %c0_0] : memref<64x32xf32, #tpu.memory_space<vmem>>, vector<64x32xf32>
    %c0_1 = arith.constant 0 : index
    %c0_2 = arith.constant 0 : index
    %c0_3 = arith.constant 0 : index
    %1 = vector.load %arg2[%c0_1, %c0_2, %c0_3] : memref<4x32x128xf32, #tpu.memory_space<vmem>>, vector<1x32x128xf32>
    %2 = vector.shape_cast %1 : vector<1x32x128xf32> to vector<32x128xf32>
    %cst = arith.constant dense<0.000000e+00> : vector<64x128xf32>
    %3 = tpu.matmul %0, %2, %cst {dimension_numbers = #tpu.dot_dimension_numbers<[1], [0], [0], [1], [0, 0, 1, 1], [], []>} : vector<64x32xf32>, vector<32x128xf32>, vector<64x128xf32> -> vector<64x128xf32>
    %c0_4 = arith.constant 0 : index
    %c0_5 = arith.constant 0 : index
    %c0_6 = arith.constant 0 : index
    %4 = vector.load %arg1[%c0_4, %c0_5, %c0_6] : memref<4x32x64xf32, #tpu.memory_space<vmem>>, vector<1x32x64xf32>
    %5 = vector.shape_cast %4 : vector<1x32x64xf32> to vector<32x64xf32>
    %cst_7 = arith.constant dense<0.000000e+00> : vector<32x128xf32>
    %6 = tpu.matmul %5, %3, %cst_7 {dimension_numbers = #tpu.dot_dimension_numbers<[1], [0], [0], [1], [0, 0, 1, 1], [], []>} : vector<32x64xf32>, vector<64x128xf32>, vector<32x128xf32> -> vector<32x128xf32>
    %c1 = arith.constant 1 : index
    %c0_8 = arith.constant 0 : index
    %c0_9 = arith.constant 0 : index
    %7 = vector.load %arg2[%c1, %c0_8, %c0_9] : memref<4x32x128xf32, #tpu.memory_space<vmem>>, vector<1x32x128xf32>
    %8 = vector.shape_cast %7 : vector<1x32x128xf32> to vector<32x128xf32>
    %cst_10 = arith.constant dense<0.000000e+00> : vector<64x128xf32>
    %9 = tpu.matmul %0, %8, %cst_10 {dimension_numbers = #tpu.dot_dimension_numbers<[1], [0], [0], [1], [0, 0, 1, 1], [], []>} : vector<64x32xf32>, vector<32x128xf32>, vector<64x128xf32> -> vector<64x128xf32>
    %c1_11 = arith.constant 1 : index
    %c0_12 = arith.constant 0 : index
    %c0_13 = arith.constant 0 : index
    %10 = vector.load %arg1[%c1_11, %c0_12, %c0_13] : memref<4x32x64xf32, #tpu.memory_space<vmem>>, vector<1x32x64xf32>
    %11 = vector.shape_cast %10 : vector<1x32x64xf32> to vector<32x64xf32>
    %cst_14 = arith.constant dense<0.000000e+00> : vector<32x128xf32>
    %12 = tpu.matmul %11, %9, %cst_14 {dimension_numbers = #tpu.dot_dimension_numbers<[1], [0], [0], [1], [0, 0, 1, 1], [], []>} : vector<32x64xf32>, vector<64x128xf32>, vector<32x128xf32> -> vector<32x128xf32>
    %13 = arith.addf %6, %12 : vector<32x128xf32>
    %c2 = arith.constant 2 : index
    %c0_15 = arith.constant 0 : index
    %c0_16 = arith.constant 0 : index
    %14 = vector.load %arg2[%c2, %c0_15, %c0_16] : memref<4x32x128xf32, #tpu.memory_space<vmem>>, vector<1x32x128xf32>
    %15 = vector.shape_cast %14 : vector<1x32x128xf32> to vector<32x128xf32>
    %cst_17 = arith.constant dense<0.000000e+00> : vector<64x128xf32>
    %16 = tpu.matmul %0, %15, %cst_17 {dimension_numbers = #tpu.dot_dimension_numbers<[1], [0], [0], [1], [0, 0, 1, 1], [], []>} : vector<64x32xf32>, vector<32x128xf32>, vector<64x128xf32> -> vector<64x128xf32>
    %c2_18 = arith.constant 2 : index
    %c0_19 = arith.constant 0 : index
    %c0_20 = arith.constant 0 : index
    %17 = vector.load %arg1[%c2_18, %c0_19, %c0_20] : memref<4x32x64xf32, #tpu.memory_space<vmem>>, vector<1x32x64xf32>
    %18 = vector.shape_cast %17 : vector<1x32x64xf32> to vector<32x64xf32>
    %cst_21 = arith.constant dense<0.000000e+00> : vector<32x128xf32>
    %19 = tpu.matmul %18, %16, %cst_21 {dimension_numbers = #tpu.dot_dimension_numbers<[1], [0], [0], [1], [0, 0, 1, 1], [], []>} : vector<32x64xf32>, vector<64x128xf32>, vector<32x128xf32> -> vector<32x128xf32>
    %20 = arith.addf %13, %19 : vector<32x128xf32>
    %c3 = arith.constant 3 : index
    %c0_22 = arith.constant 0 : index
    %c0_23 = arith.constant 0 : index
    %21 = vector.load %arg2[%c3, %c0_22, %c0_23] : memref<4x32x128xf32, #tpu.memory_space<vmem>>, vector<1x32x128xf32>
    %22 = vector.shape_cast %21 : vector<1x32x128xf32> to vector<32x128xf32>
    %cst_24 = arith.constant dense<0.000000e+00> : vector<64x128xf32>
    %23 = tpu.matmul %0, %22, %cst_24 {dimension_numbers = #tpu.dot_dimension_numbers<[1], [0], [0], [1], [0, 0, 1, 1], [], []>} : vector<64x32xf32>, vector<32x128xf32>, vector<64x128xf32> -> vector<64x128xf32>
    %c3_25 = arith.constant 3 : index
    %c0_26 = arith.constant 0 : index
    %c0_27 = arith.constant 0 : index
    %24 = vector.load %arg1[%c3_25, %c0_26, %c0_27] : memref<4x32x64xf32, #tpu.memory_space<vmem>>, vector<1x32x64xf32>
    %25 = vector.shape_cast %24 : vector<1x32x64xf32> to vector<32x64xf32>
    %cst_28 = arith.constant dense<0.000000e+00> : vector<32x128xf32>
    %26 = tpu.matmul %25, %23, %cst_28 {dimension_numbers = #tpu.dot_dimension_numbers<[1], [0], [0], [1], [0, 0, 1, 1], [], []>} : vector<32x64xf32>, vector<64x128xf32>, vector<32x128xf32> -> vector<32x128xf32>
    %27 = arith.addf %20, %26 : vector<32x128xf32>
    %cst_29 = arith.constant 5.000000e-02 : f32
    %28 = vector.broadcast %cst_29 : f32 to vector<32x128xf32>
    %29 = arith.mulf %28, %27 : vector<32x128xf32>
    %30 = arith.maximumf %27, %29 : vector<32x128xf32>
    %c0_30 = arith.constant 0 : index
    %c0_31 = arith.constant 0 : index
    %c0_32 = arith.constant 0 : index
    %31 = vector.load %arg4[%c0_30, %c0_31, %c0_32] : memref<4x128x128xf32, #tpu.memory_space<vmem>>, vector<1x128x128xf32>
    %32 = vector.shape_cast %31 : vector<1x128x128xf32> to vector<128x128xf32>
    %cst_33 = arith.constant dense<0.000000e+00> : vector<32x128xf32>
    %33 = tpu.matmul %30, %32, %cst_33 {dimension_numbers = #tpu.dot_dimension_numbers<[1], [0], [0], [1], [0, 0, 1, 1], [], []>} : vector<32x128xf32>, vector<128x128xf32>, vector<32x128xf32> -> vector<32x128xf32>
    %c0_34 = arith.constant 0 : index
    %c0_35 = arith.constant 0 : index
    %c0_36 = arith.constant 0 : index
    %34 = vector.load %arg3[%c0_34, %c0_35, %c0_36] : memref<4x16x32xf32, #tpu.memory_space<vmem>>, vector<1x16x32xf32>
    %35 = vector.shape_cast %34 : vector<1x16x32xf32> to vector<16x32xf32>
    %cst_37 = arith.constant dense<0.000000e+00> : vector<16x128xf32>
    %36 = tpu.matmul %35, %33, %cst_37 {dimension_numbers = #tpu.dot_dimension_numbers<[1], [0], [0], [1], [0, 0, 1, 1], [], []>} : vector<16x32xf32>, vector<32x128xf32>, vector<16x128xf32> -> vector<16x128xf32>
    %c1_38 = arith.constant 1 : index
    %c0_39 = arith.constant 0 : index
    %c0_40 = arith.constant 0 : index
    %37 = vector.load %arg4[%c1_38, %c0_39, %c0_40] : memref<4x128x128xf32, #tpu.memory_space<vmem>>, vector<1x128x128xf32>
    %38 = vector.shape_cast %37 : vector<1x128x128xf32> to vector<128x128xf32>
    %cst_41 = arith.constant dense<0.000000e+00> : vector<32x128xf32>
    %39 = tpu.matmul %30, %38, %cst_41 {dimension_numbers = #tpu.dot_dimension_numbers<[1], [0], [0], [1], [0, 0, 1, 1], [], []>} : vector<32x128xf32>, vector<128x128xf32>, vector<32x128xf32> -> vector<32x128xf32>
    %c1_42 = arith.constant 1 : index
    %c0_43 = arith.constant 0 : index
    %c0_44 = arith.constant 0 : index
    %40 = vector.load %arg3[%c1_42, %c0_43, %c0_44] : memref<4x16x32xf32, #tpu.memory_space<vmem>>, vector<1x16x32xf32>
    %41 = vector.shape_cast %40 : vector<1x16x32xf32> to vector<16x32xf32>
    %cst_45 = arith.constant dense<0.000000e+00> : vector<16x128xf32>
    %42 = tpu.matmul %41, %39, %cst_45 {dimension_numbers = #tpu.dot_dimension_numbers<[1], [0], [0], [1], [0, 0, 1, 1], [], []>} : vector<16x32xf32>, vector<32x128xf32>, vector<16x128xf32> -> vector<16x128xf32>
    %43 = arith.addf %36, %42 : vector<16x128xf32>
    %c2_46 = arith.constant 2 : index
    %c0_47 = arith.constant 0 : index
    %c0_48 = arith.constant 0 : index
    %44 = vector.load %arg4[%c2_46, %c0_47, %c0_48] : memref<4x128x128xf32, #tpu.memory_space<vmem>>, vector<1x128x128xf32>
    %45 = vector.shape_cast %44 : vector<1x128x128xf32> to vector<128x128xf32>
    %cst_49 = arith.constant dense<0.000000e+00> : vector<32x128xf32>
    %46 = tpu.matmul %30, %45, %cst_49 {dimension_numbers = #tpu.dot_dimension_numbers<[1], [0], [0], [1], [0, 0, 1, 1], [], []>} : vector<32x128xf32>, vector<128x128xf32>, vector<32x128xf32> -> vector<32x128xf32>
    %c2_50 = arith.constant 2 : index
    %c0_51 = arith.constant 0 : index
    %c0_52 = arith.constant 0 : index
    %47 = vector.load %arg3[%c2_50, %c0_51, %c0_52] : memref<4x16x32xf32, #tpu.memory_space<vmem>>, vector<1x16x32xf32>
    %48 = vector.shape_cast %47 : vector<1x16x32xf32> to vector<16x32xf32>
    %cst_53 = arith.constant dense<0.000000e+00> : vector<16x128xf32>
    %49 = tpu.matmul %48, %46, %cst_53 {dimension_numbers = #tpu.dot_dimension_numbers<[1], [0], [0], [1], [0, 0, 1, 1], [], []>} : vector<16x32xf32>, vector<32x128xf32>, vector<16x128xf32> -> vector<16x128xf32>
    %50 = arith.addf %43, %49 : vector<16x128xf32>
    %c3_54 = arith.constant 3 : index
    %c0_55 = arith.constant 0 : index
    %c0_56 = arith.constant 0 : index
    %51 = vector.load %arg4[%c3_54, %c0_55, %c0_56] : memref<4x128x128xf32, #tpu.memory_space<vmem>>, vector<1x128x128xf32>
    %52 = vector.shape_cast %51 : vector<1x128x128xf32> to vector<128x128xf32>
    %cst_57 = arith.constant dense<0.000000e+00> : vector<32x128xf32>
    %53 = tpu.matmul %30, %52, %cst_57 {dimension_numbers = #tpu.dot_dimension_numbers<[1], [0], [0], [1], [0, 0, 1, 1], [], []>} : vector<32x128xf32>, vector<128x128xf32>, vector<32x128xf32> -> vector<32x128xf32>
    %c3_58 = arith.constant 3 : index
    %c0_59 = arith.constant 0 : index
    %c0_60 = arith.constant 0 : index
    %54 = vector.load %arg3[%c3_58, %c0_59, %c0_60] : memref<4x16x32xf32, #tpu.memory_space<vmem>>, vector<1x16x32xf32>
    %55 = vector.shape_cast %54 : vector<1x16x32xf32> to vector<16x32xf32>
    %cst_61 = arith.constant dense<0.000000e+00> : vector<16x128xf32>
    %56 = tpu.matmul %55, %53, %cst_61 {dimension_numbers = #tpu.dot_dimension_numbers<[1], [0], [0], [1], [0, 0, 1, 1], [], []>} : vector<16x32xf32>, vector<32x128xf32>, vector<16x128xf32> -> vector<16x128xf32>
    %57 = arith.addf %50, %56 : vector<16x128xf32>
    %cst_62 = arith.constant dense<0.000000e+00> : vector<128xf32>
    %58 = vector.multi_reduction <add>, %57, %cst_62 [0] : vector<16x128xf32> to vector<128xf32>
    %59 = vector.shape_cast %58 : vector<128xf32> to vector<1x128xf32>
    %c0_63 = arith.constant 0 : index
    %c0_64 = arith.constant 0 : index
    %60 = vector.load %arg7[%c0_63, %c0_64] : memref<128x16xf32, #tpu.memory_space<vmem>>, vector<128x16xf32>
    %cst_65 = arith.constant dense<0.000000e+00> : vector<1x16xf32>
    %61 = tpu.matmul %59, %60, %cst_65 {dimension_numbers = #tpu.dot_dimension_numbers<[1], [0], [0], [1], [0, 0, 1, 1], [], []>} : vector<1x128xf32>, vector<128x16xf32>, vector<1x16xf32> -> vector<1x16xf32>
    %62 = arith.mulf %57, %57 : vector<16x128xf32>
    %cst_66 = arith.constant dense<0.000000e+00> : vector<128xf32>
    %63 = vector.multi_reduction <add>, %62, %cst_66 [0] : vector<16x128xf32> to vector<128xf32>
    %64 = vector.shape_cast %63 : vector<128xf32> to vector<1x128xf32>
    %c0_67 = arith.constant 0 : index
    %c0_68 = arith.constant 0 : index
    %65 = vector.load %arg7[%c0_67, %c0_68] : memref<128x16xf32, #tpu.memory_space<vmem>>, vector<128x16xf32>
    %cst_69 = arith.constant dense<0.000000e+00> : vector<1x16xf32>
    %66 = tpu.matmul %64, %65, %cst_69 {dimension_numbers = #tpu.dot_dimension_numbers<[1], [0], [0], [1], [0, 0, 1, 1], [], []>} : vector<1x128xf32>, vector<128x16xf32>, vector<1x16xf32> -> vector<1x16xf32>
    %cst_70 = arith.constant 7.812500e-03 : f32
    %67 = vector.broadcast %cst_70 : f32 to vector<1x16xf32>
    %68 = arith.mulf %61, %67 : vector<1x16xf32>
    %cst_71 = arith.constant 7.812500e-03 : f32
    %69 = vector.broadcast %cst_71 : f32 to vector<1x16xf32>
    %70 = arith.mulf %66, %69 : vector<1x16xf32>
    %71 = arith.mulf %68, %68 : vector<1x16xf32>
    %72 = arith.subf %70, %71 : vector<1x16xf32>
    %cst_72 = arith.constant 0.000000e+00 : f32
    %73 = vector.broadcast %cst_72 : f32 to vector<1x16xf32>
    %74 = arith.maximumf %72, %73 : vector<1x16xf32>
    %c0_73 = arith.constant 0 : index
    %c0_74 = arith.constant 0 : index
    %75 = vector.load %arg5[%c0_73, %c0_74] : memref<1x16xf32, #tpu.memory_space<vmem>>, vector<1x16xf32>
    %cst_75 = arith.constant 9.99999974E-6 : f32
    %76 = vector.broadcast %cst_75 : f32 to vector<1x16xf32>
    %77 = arith.addf %74, %76 : vector<1x16xf32>
    %78 = math.rsqrt %77 : vector<1x16xf32>
    %79 = arith.mulf %75, %78 : vector<1x16xf32>
    %c0_76 = arith.constant 0 : index
    %c0_77 = arith.constant 0 : index
    %80 = vector.load %arg6[%c0_76, %c0_77] : memref<1x16xf32, #tpu.memory_space<vmem>>, vector<1x16xf32>
    %81 = arith.mulf %68, %79 : vector<1x16xf32>
    %82 = arith.subf %80, %81 : vector<1x16xf32>
    %c0_78 = arith.constant 0 : index
    %c0_79 = arith.constant 0 : index
    %83 = vector.load %arg8[%c0_78, %c0_79] : memref<16x128xf32, #tpu.memory_space<vmem>>, vector<16x128xf32>
    %cst_80 = arith.constant dense<0.000000e+00> : vector<1x128xf32>
    %84 = tpu.matmul %79, %83, %cst_80 {dimension_numbers = #tpu.dot_dimension_numbers<[1], [0], [0], [1], [0, 0, 1, 1], [], []>} : vector<1x16xf32>, vector<16x128xf32>, vector<1x128xf32> -> vector<1x128xf32>
    %c0_81 = arith.constant 0 : index
    %c0_82 = arith.constant 0 : index
    %85 = vector.load %arg8[%c0_81, %c0_82] : memref<16x128xf32, #tpu.memory_space<vmem>>, vector<16x128xf32>
    %cst_83 = arith.constant dense<0.000000e+00> : vector<1x128xf32>
    %86 = tpu.matmul %82, %85, %cst_83 {dimension_numbers = #tpu.dot_dimension_numbers<[1], [0], [0], [1], [0, 0, 1, 1], [], []>} : vector<1x16xf32>, vector<16x128xf32>, vector<1x128xf32> -> vector<1x128xf32>
    %87 = vector.broadcast %84 : vector<1x128xf32> to vector<16x128xf32>
    %88 = arith.mulf %57, %87 : vector<16x128xf32>
    %89 = vector.broadcast %86 : vector<1x128xf32> to vector<16x128xf32>
    %90 = arith.addf %88, %89 : vector<16x128xf32>
    %cst_84 = arith.constant 5.000000e-02 : f32
    %91 = vector.broadcast %cst_84 : f32 to vector<16x128xf32>
    %92 = arith.mulf %91, %90 : vector<16x128xf32>
    %93 = arith.maximumf %90, %92 : vector<16x128xf32>
    %c0_85 = arith.constant 0 : index
    %c0_86 = arith.constant 0 : index
    %c0_87 = arith.constant 0 : index
    %94 = vector.load %arg10[%c0_85, %c0_86, %c0_87] : memref<4x128x128xf32, #tpu.memory_space<vmem>>, vector<1x128x128xf32>
    %95 = vector.shape_cast %94 : vector<1x128x128xf32> to vector<128x128xf32>
    %cst_88 = arith.constant dense<0.000000e+00> : vector<16x128xf32>
    %96 = tpu.matmul %93, %95, %cst_88 {dimension_numbers = #tpu.dot_dimension_numbers<[1], [0], [0], [1], [0, 0, 1, 1], [], []>} : vector<16x128xf32>, vector<128x128xf32>, vector<16x128xf32> -> vector<16x128xf32>
    %c0_89 = arith.constant 0 : index
    %c0_90 = arith.constant 0 : index
    %c0_91 = arith.constant 0 : index
    %97 = vector.load %arg9[%c0_89, %c0_90, %c0_91] : memref<4x8x16xf32, #tpu.memory_space<vmem>>, vector<1x8x16xf32>
    %98 = vector.shape_cast %97 : vector<1x8x16xf32> to vector<8x16xf32>
    %cst_92 = arith.constant dense<0.000000e+00> : vector<8x128xf32>
    %99 = tpu.matmul %98, %96, %cst_92 {dimension_numbers = #tpu.dot_dimension_numbers<[1], [0], [0], [1], [0, 0, 1, 1], [], []>} : vector<8x16xf32>, vector<16x128xf32>, vector<8x128xf32> -> vector<8x128xf32>
    %c1_93 = arith.constant 1 : index
    %c0_94 = arith.constant 0 : index
    %c0_95 = arith.constant 0 : index
    %100 = vector.load %arg10[%c1_93, %c0_94, %c0_95] : memref<4x128x128xf32, #tpu.memory_space<vmem>>, vector<1x128x128xf32>
    %101 = vector.shape_cast %100 : vector<1x128x128xf32> to vector<128x128xf32>
    %cst_96 = arith.constant dense<0.000000e+00> : vector<16x128xf32>
    %102 = tpu.matmul %93, %101, %cst_96 {dimension_numbers = #tpu.dot_dimension_numbers<[1], [0], [0], [1], [0, 0, 1, 1], [], []>} : vector<16x128xf32>, vector<128x128xf32>, vector<16x128xf32> -> vector<16x128xf32>
    %c1_97 = arith.constant 1 : index
    %c0_98 = arith.constant 0 : index
    %c0_99 = arith.constant 0 : index
    %103 = vector.load %arg9[%c1_97, %c0_98, %c0_99] : memref<4x8x16xf32, #tpu.memory_space<vmem>>, vector<1x8x16xf32>
    %104 = vector.shape_cast %103 : vector<1x8x16xf32> to vector<8x16xf32>
    %cst_100 = arith.constant dense<0.000000e+00> : vector<8x128xf32>
    %105 = tpu.matmul %104, %102, %cst_100 {dimension_numbers = #tpu.dot_dimension_numbers<[1], [0], [0], [1], [0, 0, 1, 1], [], []>} : vector<8x16xf32>, vector<16x128xf32>, vector<8x128xf32> -> vector<8x128xf32>
    %106 = arith.addf %99, %105 : vector<8x128xf32>
    %c2_101 = arith.constant 2 : index
    %c0_102 = arith.constant 0 : index
    %c0_103 = arith.constant 0 : index
    %107 = vector.load %arg10[%c2_101, %c0_102, %c0_103] : memref<4x128x128xf32, #tpu.memory_space<vmem>>, vector<1x128x128xf32>
    %108 = vector.shape_cast %107 : vector<1x128x128xf32> to vector<128x128xf32>
    %cst_104 = arith.constant dense<0.000000e+00> : vector<16x128xf32>
    %109 = tpu.matmul %93, %108, %cst_104 {dimension_numbers = #tpu.dot_dimension_numbers<[1], [0], [0], [1], [0, 0, 1, 1], [], []>} : vector<16x128xf32>, vector<128x128xf32>, vector<16x128xf32> -> vector<16x128xf32>
    %c2_105 = arith.constant 2 : index
    %c0_106 = arith.constant 0 : index
    %c0_107 = arith.constant 0 : index
    %110 = vector.load %arg9[%c2_105, %c0_106, %c0_107] : memref<4x8x16xf32, #tpu.memory_space<vmem>>, vector<1x8x16xf32>
    %111 = vector.shape_cast %110 : vector<1x8x16xf32> to vector<8x16xf32>
    %cst_108 = arith.constant dense<0.000000e+00> : vector<8x128xf32>
    %112 = tpu.matmul %111, %109, %cst_108 {dimension_numbers = #tpu.dot_dimension_numbers<[1], [0], [0], [1], [0, 0, 1, 1], [], []>} : vector<8x16xf32>, vector<16x128xf32>, vector<8x128xf32> -> vector<8x128xf32>
    %113 = arith.addf %106, %112 : vector<8x128xf32>
    %c3_109 = arith.constant 3 : index
    %c0_110 = arith.constant 0 : index
    %c0_111 = arith.constant 0 : index
    %114 = vector.load %arg10[%c3_109, %c0_110, %c0_111] : memref<4x128x128xf32, #tpu.memory_space<vmem>>, vector<1x128x128xf32>
    %115 = vector.shape_cast %114 : vector<1x128x128xf32> to vector<128x128xf32>
    %cst_112 = arith.constant dense<0.000000e+00> : vector<16x128xf32>
    %116 = tpu.matmul %93, %115, %cst_112 {dimension_numbers = #tpu.dot_dimension_numbers<[1], [0], [0], [1], [0, 0, 1, 1], [], []>} : vector<16x128xf32>, vector<128x128xf32>, vector<16x128xf32> -> vector<16x128xf32>
    %c3_113 = arith.constant 3 : index
    %c0_114 = arith.constant 0 : index
    %c0_115 = arith.constant 0 : index
    %117 = vector.load %arg9[%c3_113, %c0_114, %c0_115] : memref<4x8x16xf32, #tpu.memory_space<vmem>>, vector<1x8x16xf32>
    %118 = vector.shape_cast %117 : vector<1x8x16xf32> to vector<8x16xf32>
    %cst_116 = arith.constant dense<0.000000e+00> : vector<8x128xf32>
    %119 = tpu.matmul %118, %116, %cst_116 {dimension_numbers = #tpu.dot_dimension_numbers<[1], [0], [0], [1], [0, 0, 1, 1], [], []>} : vector<8x16xf32>, vector<16x128xf32>, vector<8x128xf32> -> vector<8x128xf32>
    %120 = arith.addf %113, %119 : vector<8x128xf32>
    %cst_117 = arith.constant dense<0.000000e+00> : vector<128xf32>
    %121 = vector.multi_reduction <add>, %120, %cst_117 [0] : vector<8x128xf32> to vector<128xf32>
    %122 = vector.shape_cast %121 : vector<128xf32> to vector<1x128xf32>
    %c0_118 = arith.constant 0 : index
    %c0_119 = arith.constant 0 : index
    %123 = vector.load %arg13[%c0_118, %c0_119] : memref<128x32xf32, #tpu.memory_space<vmem>>, vector<128x32xf32>
    %cst_120 = arith.constant dense<0.000000e+00> : vector<1x32xf32>
    %124 = tpu.matmul %122, %123, %cst_120 {dimension_numbers = #tpu.dot_dimension_numbers<[1], [0], [0], [1], [0, 0, 1, 1], [], []>} : vector<1x128xf32>, vector<128x32xf32>, vector<1x32xf32> -> vector<1x32xf32>
    %125 = arith.mulf %120, %120 : vector<8x128xf32>
    %cst_121 = arith.constant dense<0.000000e+00> : vector<128xf32>
    %126 = vector.multi_reduction <add>, %125, %cst_121 [0] : vector<8x128xf32> to vector<128xf32>
    %127 = vector.shape_cast %126 : vector<128xf32> to vector<1x128xf32>
    %c0_122 = arith.constant 0 : index
    %c0_123 = arith.constant 0 : index
    %128 = vector.load %arg13[%c0_122, %c0_123] : memref<128x32xf32, #tpu.memory_space<vmem>>, vector<128x32xf32>
    %cst_124 = arith.constant dense<0.000000e+00> : vector<1x32xf32>
    %129 = tpu.matmul %127, %128, %cst_124 {dimension_numbers = #tpu.dot_dimension_numbers<[1], [0], [0], [1], [0, 0, 1, 1], [], []>} : vector<1x128xf32>, vector<128x32xf32>, vector<1x32xf32> -> vector<1x32xf32>
    %cst_125 = arith.constant 3.125000e-02 : f32
    %130 = vector.broadcast %cst_125 : f32 to vector<1x32xf32>
    %131 = arith.mulf %124, %130 : vector<1x32xf32>
    %cst_126 = arith.constant 3.125000e-02 : f32
    %132 = vector.broadcast %cst_126 : f32 to vector<1x32xf32>
    %133 = arith.mulf %129, %132 : vector<1x32xf32>
    %134 = arith.mulf %131, %131 : vector<1x32xf32>
    %135 = arith.subf %133, %134 : vector<1x32xf32>
    %cst_127 = arith.constant 0.000000e+00 : f32
    %136 = vector.broadcast %cst_127 : f32 to vector<1x32xf32>
    %137 = arith.maximumf %135, %136 : vector<1x32xf32>
    %c0_128 = arith.constant 0 : index
    %c0_129 = arith.constant 0 : index
    %138 = vector.load %arg11[%c0_128, %c0_129] : memref<1x32xf32, #tpu.memory_space<vmem>>, vector<1x32xf32>
    %cst_130 = arith.constant 9.99999974E-6 : f32
    %139 = vector.broadcast %cst_130 : f32 to vector<1x32xf32>
    %140 = arith.addf %137, %139 : vector<1x32xf32>
    %141 = math.rsqrt %140 : vector<1x32xf32>
    %142 = arith.mulf %138, %141 : vector<1x32xf32>
    %c0_131 = arith.constant 0 : index
    %c0_132 = arith.constant 0 : index
    %143 = vector.load %arg12[%c0_131, %c0_132] : memref<1x32xf32, #tpu.memory_space<vmem>>, vector<1x32xf32>
    %144 = arith.mulf %131, %142 : vector<1x32xf32>
    %145 = arith.subf %143, %144 : vector<1x32xf32>
    %c0_133 = arith.constant 0 : index
    %c0_134 = arith.constant 0 : index
    %146 = vector.load %arg14[%c0_133, %c0_134] : memref<32x128xf32, #tpu.memory_space<vmem>>, vector<32x128xf32>
    %cst_135 = arith.constant dense<0.000000e+00> : vector<1x128xf32>
    %147 = tpu.matmul %142, %146, %cst_135 {dimension_numbers = #tpu.dot_dimension_numbers<[1], [0], [0], [1], [0, 0, 1, 1], [], []>} : vector<1x32xf32>, vector<32x128xf32>, vector<1x128xf32> -> vector<1x128xf32>
    %c0_136 = arith.constant 0 : index
    %c0_137 = arith.constant 0 : index
    %148 = vector.load %arg14[%c0_136, %c0_137] : memref<32x128xf32, #tpu.memory_space<vmem>>, vector<32x128xf32>
    %cst_138 = arith.constant dense<0.000000e+00> : vector<1x128xf32>
    %149 = tpu.matmul %145, %148, %cst_138 {dimension_numbers = #tpu.dot_dimension_numbers<[1], [0], [0], [1], [0, 0, 1, 1], [], []>} : vector<1x32xf32>, vector<32x128xf32>, vector<1x128xf32> -> vector<1x128xf32>
    %150 = vector.broadcast %147 : vector<1x128xf32> to vector<8x128xf32>
    %151 = arith.mulf %120, %150 : vector<8x128xf32>
    %152 = vector.broadcast %149 : vector<1x128xf32> to vector<8x128xf32>
    %153 = arith.addf %151, %152 : vector<8x128xf32>
    %cst_139 = arith.constant 5.000000e-02 : f32
    %154 = vector.broadcast %cst_139 : f32 to vector<8x128xf32>
    %155 = arith.mulf %154, %153 : vector<8x128xf32>
    %156 = arith.maximumf %153, %155 : vector<8x128xf32>
    %c0_140 = arith.constant 0 : index
    %c0_141 = arith.constant 0 : index
    %c0_142 = arith.constant 0 : index
    %157 = vector.load %arg15[%c0_140, %c0_141, %c0_142] : memref<1x8x128xf32, #tpu.memory_space<vmem>>, vector<1x8x128xf32>
    %158 = vector.shape_cast %157 : vector<1x8x128xf32> to vector<8x128xf32>
    %159 = arith.mulf %156, %158 : vector<8x128xf32>
    %cst_143 = arith.constant dense<0.000000e+00> : vector<8xf32>
    %160 = vector.multi_reduction <add>, %159, %cst_143 [1] : vector<8x128xf32> to vector<8xf32>
    %161 = vector.shape_cast %160 : vector<8xf32> to vector<8x1xf32>
    %c0_144 = arith.constant 0 : index
    %c0_145 = arith.constant 0 : index
    %162 = vector.load %arg16[%c0_144, %c0_145] : memref<2x8xf32, #tpu.memory_space<vmem>>, vector<2x8xf32>
    %cst_146 = arith.constant dense<0.000000e+00> : vector<2x1xf32>
    %163 = tpu.matmul %162, %161, %cst_146 {dimension_numbers = #tpu.dot_dimension_numbers<[1], [0], [0], [1], [0, 0, 1, 1], [], []>} : vector<2x8xf32>, vector<8x1xf32>, vector<2x1xf32> -> vector<2x1xf32>
    %c0_147 = arith.constant 0 : index
    %c0_148 = arith.constant 0 : index
    %164 = vector.load %arg17[%c0_147, %c0_148] : memref<2x1xf32, #tpu.memory_space<vmem>>, vector<2x1xf32>
    tpu.vector_store %arg17[%c0_147, %c0_148], %163 {strides = array<i32>} : memref<2x1xf32, #tpu.memory_space<vmem>>, vector<2x1xf32>,
    return
  }
}

</mosaic_0001>

<bundles_post_ra>
// kernel: d_b_forward.1
= control target key start
LH: loop header
LB: loop body
LE: loop exit
PB: predicated region body
PF: predicated region fallthrough
CT: control target
= control target key end

     0   :  { %vm68_vm0 = vcmask 261120   ;;  %vm317_vm1 = vcmask 523264   ;;  %vm4962_vm2 = vmmov 0   ;;  %vm1884_vm3 = vcmask 130048   ;;  %s5922_s2 = inlined_call_operand.vmem [shape: f32[4,32,128], index: 2, kind: input, shape index: {}]   ;;  %s5923_s0 = inlined_call_operand.vmem [shape: f32[64,32], index: 0, kind: input, shape index: {}]   ;;  %s5924_s1 = inlined_call_operand.vmem [shape: f32[4,32,64], index: 1, kind: input, shape index: {}]   ;;  %s5925_s4 = inlined_call_operand.vmem [shape: f32[4,128,128], index: 4, kind: input, shape index: {}]   ;;  %s5926_s3 = inlined_call_operand.vmem [shape: f32[4,16,32], index: 3, kind: input, shape index: {}]   ;;  %s5927_s7 = inlined_call_operand.vmem [shape: f32[128,16], index: 7, kind: input, shape index: {}]   ;;  %s5928_s8 = inlined_call_operand.vmem [shape: f32[16,128], index: 8, kind: input, shape index: {}]   ;;  %s5929_s10 = inlined_call_operand.vmem [shape: f32[4,128,128], index: 10, kind: input, shape index: {}]   ;;  %s5930_s5 = inlined_call_operand.vmem [shape: f32[1,16], index: 5, kind: input, shape index: {}]   ;;  %s5931_s6 = inlined_call_operand.vmem [shape: f32[1,16], index: 6, kind: input, shape index: {}]   ;;  %s5932_s9 = inlined_call_operand.vmem [shape: f32[4,8,16], index: 9, kind: input, shape index: {}]   ;;  %s5933_s13 = inlined_call_operand.vmem [shape: f32[128,32], index: 13, kind: input, shape index: {}]   ;;  %s5934_s14 = inlined_call_operand.vmem [shape: f32[32,128], index: 14, kind: input, shape index: {}]   ;;  %s5935_s11 = inlined_call_operand.vmem [shape: f32[1,32], index: 11, kind: input, shape index: {}]   ;;  %s5936_s12 = inlined_call_operand.vmem [shape: f32[1,32], index: 12, kind: input, shape index: {}]   ;;  %s5937_s15 = inlined_call_operand.vmem [shape: f32[1,8,128], index: 15, kind: input, shape index: {}]   ;;  %s5938_s16 = inlined_call_operand.vmem [shape: f32[2,8], index: 16, kind: input, shape index: {}]   ;;  %s5939_s17 = inlined_call_operand.vmem [shape: f32[2,1], index: 17, kind: output, shape index: {}]  }
   0x1   :  { %5942 = sst [smem:[#allocation2_spill]] %s5922_s2  ;;  %v3163_v32 = vld [vmem:[%s5924_s1 + $0x20] sm:$0xff]  ;;  %v953_v34 = vld [vmem:[%s5925_s4 + $0x8] sm:$0xff]  ;;  %v954_v36 = vld [vmem:[%s5925_s4 + $0x10] sm:$0xff]  ;;  %vm3063_vm4 = vcmask 64512   ;;  %vm3137_vm5 = vcmask 1024  }
   0x2   :  { %5943 = sst [smem:[#allocation3_spill]] %s5923_s0  ;;  %s5944_s26 = sld [smem:[#allocation2_spill]]  ;;  %v952_v33 = vld [vmem:[%s5925_s4] sm:$0xff]  ;;  %v955_v37 = vld [vmem:[%s5925_s4 + $0x18] sm:$0xff]  ;;  %v957_v40 = vld [vmem:[%s5925_s4 + $0x28] sm:$0xff] }
   0x3   :  { %s5945_s20 = sld [smem:[#allocation3_spill]]  ;;  %v4516_v35 = vpack.c.bf16 %v953_v34, %v952_v33  ;;  %v4520_v38 = vpack.c.bf16 %v955_v37, %v954_v36  ;;  %v956_v39 = vld [vmem:[%s5925_s4 + $0x20] sm:$0xff]  ;;  %v958_v42 = vld [vmem:[%s5925_s4 + $0x30] sm:$0xff]  ;;  %v959_v43 = vld [vmem:[%s5925_s4 + $0x38] sm:$0xff] }
   0x4   :  { %v4524_v41 = vpack.c.bf16 %v957_v40, %v956_v39  ;;  %v4528_v44 = vpack.c.bf16 %v959_v43, %v958_v42  ;;  %v960_v45 = vld [vmem:[%s5925_s4 + $0x40] sm:$0xff]  ;;  %v961_v46 = vld [vmem:[%s5925_s4 + $0x48] sm:$0xff]  ;;  %v962_v48 = vld [vmem:[%s5925_s4 + $0x50] sm:$0xff] }
   0x5   :  { %v4532_v47 = vpack.c.bf16 %v961_v46, %v960_v45  ;;  %v963_v49 = vld [vmem:[%s5925_s4 + $0x58] sm:$0xff]  ;;  %v964_v51 = vld [vmem:[%s5925_s4 + $0x60] sm:$0xff]  ;;  %v965_v52 = vld [vmem:[%s5925_s4 + $0x68] sm:$0xff] }
   0x6   :  { %v4536_v50 = vpack.c.bf16 %v963_v49, %v962_v48  ;;  %v4540_v53 = vpack.c.bf16 %v965_v52, %v964_v51  ;;  %v200_v33 = vld [vmem:[%s5924_s1 + $0x10] sm:$0xff]  ;;  %v201_v36 = vld [vmem:[%s5924_s1 + $0x18] sm:$0xff]  ;;  %v3188_v46 = vld [vmem:[%s5924_s1 + $0x48] sm:$0xff] }
   0x7   :  { %v3190_v48 = vld [vmem:[%s5924_s1 + $0x58] sm:$0xff]  ;;  %v3207_v49 = vld [vmem:[%s5924_s1 + $0x60] sm:$0xff]  ;;  %v3216_v51 = vld [vmem:[%s5925_s4 + $0x88] sm:$0xff] }
   0x8   :  { %v3151_v0 = vld [vmem:[%s5944_s26 + $0x20] sm:$0xff]  ;;  %v3152_v1 = vld [vmem:[%s5944_s26 + $0x28] sm:$0xff]  ;;  %v3153_v2 = vld [vmem:[%s5944_s26 + $0x30] sm:$0xff] }
   0x9   :  { %v4428_v3 = vpack.c.bf16 %v3152_v1, %v3151_v0  ;;  %v3154_v4 = vld [vmem:[%s5944_s26 + $0x38] sm:$0xff]  ;;  %v5069_v5 = vld [vmem:[%s5945_s20] sm:$0xff]  ;;  %v65_v8 = vld [vmem:[%s5944_s26 + $0x8] sm:$0xff] }
   0xa   :  { %v4432_v6 = vpack.c.bf16 %v3154_v4, %v3153_v2  ;;  %3735 = vmatprep.mubr.msk.f32.mxu1 %vm68_vm0, %v5069_v5  ;;  %v64_v7 = vld [vmem:[%s5944_s26] sm:$0xff]  ;;  %3715 = vmatprep.mubr.msk.f32.mxu0 %vm68_vm0, %v5069_v5  ;;  %v66_v10 = vld [vmem:[%s5944_s26 + $0x10] sm:$0xff]  ;;  %v67_v11 = vld [vmem:[%s5944_s26 + $0x18] sm:$0xff] }
   0xb   :  { %4429 = vmatprep.subr.bf16.mxu1 %v4428_v3  ;;  %v4420_v9 = vpack.c.bf16 %v65_v8, %v64_v7  ;;  %v4424_v12 = vpack.c.bf16 %v67_v11, %v66_v10  ;;  %v3175_v13 = vld [vmem:[%s5944_s26 + $0x40] sm:$0xff]  ;;  %v3176_v14 = vld [vmem:[%s5944_s26 + $0x48] sm:$0xff]  ;;  %v3177_v16 = vld [vmem:[%s5944_s26 + $0x50] sm:$0xff] }
   0xc   :  { %4431 = vmatpush3.bf16.msra.mxu1 %v4428_v3  ;;  %v4468_v15 = vpack.c.bf16 %v3176_v14, %v3175_v13  ;;  %v3178_v17 = vld [vmem:[%s5944_s26 + $0x58] sm:$0xff]  ;;  %v57_v18 = vld [vmem:[%s5945_s20 + $0x8] sm:$0xff]  ;;  %v58_v19 = vld [vmem:[%s5945_s20 + $0x10] sm:$0xff] }
   0xd   :  { %4433 = vmatprep.subr.bf16.mxu1 %v4432_v6  ;;  %4421 = vmatprep.subr.bf16.mxu0 %v4420_v9  ;;  %v4472_v20 = vpack.c.bf16 %v3178_v17, %v3177_v16  ;;  %v3195_v21 = vld [vmem:[%s5944_s26 + $0x60] sm:$0xff]  ;;  %v3196_v22 = vld [vmem:[%s5944_s26 + $0x68] sm:$0xff]  ;;  %v59_v23 = vld [vmem:[%s5945_s20 + $0x18] sm:$0xff] }
   0xe   :  { %4423 = vmatpush3.bf16.msra.mxu0 %v4420_v9  ;;  %v60_v24 = vld [vmem:[%s5945_s20 + $0x20] sm:$0xff]  ;;  %v4492_v25 = vpack.c.bf16 %v3196_v22, %v3195_v21  ;;  %v61_v26 = vld [vmem:[%s5945_s20 + $0x28] sm:$0xff]  ;;  %v62_v27 = vld [vmem:[%s5945_s20 + $0x30] sm:$0xff] }
   0xf   :  { %4425 = vmatprep.subr.bf16.mxu0 %v4424_v12  ;;  %v63_v28 = vld [vmem:[%s5945_s20 + $0x38] sm:$0xff]  ;;  %v3197_v29 = vld [vmem:[%s5944_s26 + $0x70] sm:$0xff]  ;;  %v3164_v14 = vld [vmem:[%s5924_s1 + $0x28] sm:$0xff] }
  0x10   :  { %4435 = vmatpush3.bf16.msra.mxu1 %v4432_v6  ;;  %v3198_v30 = vld [vmem:[%s5944_s26 + $0x78] sm:$0xff]  ;;  %v3165_v17 = vld [vmem:[%s5924_s1 + $0x30] sm:$0xff]  ;;  %v198_v22 = vld [vmem:[%s5924_s1] sm:$0xff] }
  0x11   :  { %4469 = vmatprep.subr.bf16.mxu1 %v4468_v15  ;;  %v4496_v31 = vpack.c.bf16 %v3198_v30, %v3197_v29 }
  0x12   :  { %4427 = vmatpush3.bf16.msra.mxu0 %v4424_v12 }
  0x13   :  { %3736 = vmatmul.mubr.msk.f32.vlgmr.msra.gmra.mrb[0].mxu1 %vm68_vm0, %v57_v18 }
  0x14   :  { %3738 = vmatprep.mubr.msk.f32.mxu1 %vm68_vm0, %v58_v19  ;;  %4471 = vmatpush3.bf16.msra.mxu1 %v4468_v15 }
  0x15   :  { %4473 = vmatprep.subr.bf16.mxu1 %v4472_v20  ;;  %3716 = vmatmul.mubr.msk.f32.vlgmr.msra.gmra.mrb[0].mxu0 %vm68_vm0, %v57_v18 }
  0x16   :  { %3718 = vmatprep.mubr.msk.f32.mxu0 %vm68_vm0, %v58_v19 }
  0x17   :  { %3739 = vmatmul.mubr.msk.f32.gmra.mrb[2].mxu1 %vm68_vm0, %v59_v23 }
  0x18   :  { %3741 = vmatprep.mubr.msk.f32.mxu1 %vm68_vm0, %v60_v24  ;;  %4475 = vmatpush3.bf16.msra.mxu1 %v4472_v20  ;;  %v3166_v20 = vld [vmem:[%s5924_s1 + $0x38] sm:$0xff] }
  0x19   :  { %4493 = vmatprep.subr.bf16.mxu1 %v4492_v25  ;;  %3719 = vmatmul.mubr.msk.f32.gmra.mrb[2].mxu0 %vm68_vm0, %v59_v23 }
  0x1a   :  { %3721 = vmatprep.mubr.msk.f32.mxu0 %vm68_vm0, %v60_v24 }
  0x1b   :  { %3742 = vmatmul.mubr.msk.f32.gmra.mrb[4].mxu1 %vm68_vm0, %v61_v26 }
  0x1c   :  { %3744 = vmatprep.mubr.msk.f32.mxu1 %vm68_vm0, %v62_v27 }
  0x1d   :  { %3722 = vmatmul.mubr.msk.f32.gmra.mrb[4].mxu0 %vm68_vm0, %v61_v26 }
  0x1e   :  { %3724 = vmatprep.mubr.msk.f32.mxu0 %vm68_vm0, %v62_v27 }
  0x1f   :  { %3745 = vmatmul.mubr.msk.f32.gmra.mrb[6].mxu1 %vm68_vm0, %v63_v28 }
  0x20   :  { %3799 = vmatprep.mubr.msk.f32.mxu1 %vm68_vm0, %v5069_v5 }
  0x21   :  { %3725 = vmatmul.mubr.msk.f32.gmra.mrb[6].mxu0 %vm68_vm0, %v63_v28 }
  0x22   :  { %3763 = vmatprep.mubr.msk.f32.mxu0 %vm317_vm1, %v3163_v32 }
  0x23   :  { %3800 = vmatmul.mubr.msk.f32.vlgmr.msra.gmra.mrb[8].mxu1 %vm68_vm0, %v57_v18 }
  0x24   :  { %3802 = vmatprep.mubr.msk.f32.mxu1 %vm68_vm0, %v58_v19  ;;  %4495 = vmatpush3.bf16.msra.mxu1 %v4492_v25 }
  0x25   :  { %4497 = vmatprep.subr.bf16.mxu1 %v4496_v31 }
  0x27   :  { %3803 = vmatmul.mubr.msk.f32.gmra.mrb[10].mxu1 %vm68_vm0, %v59_v23 }
  0x28   :  { %3805 = vmatprep.mubr.msk.f32.mxu1 %vm68_vm0, %v60_v24  ;;  %4499 = vmatpush3.bf16.msra.mxu1 %v4496_v31  ;;  %v199_v31 = vld [vmem:[%s5924_s1 + $0x8] sm:$0xff] }
  0x29   :  { %4517 = vmatprep.subr.bf16.mxu1 %v4516_v35 }
  0x2b   :  { %3806 = vmatmul.mubr.msk.f32.gmra.mrb[12].mxu1 %vm68_vm0, %v61_v26 }
  0x2c   :  { %3808 = vmatprep.mubr.msk.f32.mxu1 %vm68_vm0, %v62_v27 }
  0x2f   :  { %3809 = vmatmul.mubr.msk.f32.gmra.mrb[14].mxu1 %vm68_vm0, %v63_v28 }
  0x30   :  { %3841 = vmatprep.mubr.msk.f32.mxu1 %vm68_vm0, %v5069_v5 }
  0x33   :  { %3842 = vmatmul.mubr.msk.f32.vlgmr.msra.gmra.mrb[16].mxu1 %vm68_vm0, %v57_v18 }
  0x34   :  { %3844 = vmatprep.mubr.msk.f32.mxu1 %vm68_vm0, %v58_v19  ;;  %4519 = vmatpush3.bf16.msra.mxu1 %v4516_v35 }
  0x35   :  { %4521 = vmatprep.subr.bf16.mxu1 %v4520_v38 }
  0x37   :  { %3845 = vmatmul.mubr.msk.f32.gmra.mrb[18].mxu1 %vm68_vm0, %v59_v23 }
  0x38   :  { %3847 = vmatprep.mubr.msk.f32.mxu1 %vm68_vm0, %v60_v24  ;;  %4523 = vmatpush3.bf16.msra.mxu1 %v4520_v38  ;;  %v3187_v38 = vld [vmem:[%s5924_s1 + $0x40] sm:$0xff] }
  0x39   :  { %4525 = vmatprep.subr.bf16.mxu1 %v4524_v41 }
  0x3b   :  { %3848 = vmatmul.mubr.msk.f32.gmra.mrb[20].mxu1 %vm68_vm0, %v61_v26 }
  0x3c   :  { %3850 = vmatprep.mubr.msk.f32.mxu1 %vm68_vm0, %v62_v27  ;;  %4527 = vmatpush3.bf16.msra.mxu1 %v4524_v41 }
  0x3d   :  { %4529 = vmatprep.subr.bf16.mxu1 %v4528_v44 }
  0x3f   :  { %3851 = vmatmul.mubr.msk.f32.gmra.mrb[22].mxu1 %vm68_vm0, %v63_v28 }
  0x40   :  { %4531 = vmatpush3.bf16.msra.mxu1 %v4528_v44 }
  0x41   :  { %4533 = vmatprep.subr.bf16.mxu1 %v4532_v47 }
  0x44   :  { %4535 = vmatpush3.bf16.msra.mxu1 %v4532_v47  ;;  %v3189_v47 = vld [vmem:[%s5924_s1 + $0x50] sm:$0xff] }
  0x45   :  { %4537 = vmatprep.subr.bf16.mxu1 %v4536_v50 }
  0x48   :  { %4539 = vmatpush3.bf16.msra.mxu1 %v4536_v50  ;;  %v3215_v50 = vld [vmem:[%s5925_s4 + $0x80] sm:$0xff] }
  0x49   :  { %4541 = vmatprep.subr.bf16.mxu1 %v4540_v53  ;;  %v4548_v52 = vpack.c.bf16 %v3216_v51, %v3215_v50  ;;  %v3272_v50 = vld [vmem:[%s5925_s4 + $0x1f8] sm:$0xff] }
  0x4c   :  { %4543 = vmatpush3.bf16.msra.mxu1 %v4540_v53  ;;  %v3217_v53 = vld [vmem:[%s5925_s4 + $0x90] sm:$0xff] }
  0xe6   :  { %v3737_v54 = vpop.f32.mrb[0].mxu1 }
  0xe7   :  { %v273_v55 = vpop.f32.mrb[1].mxu1 }
  0xe8   :  { %v4436_v56 = vpack.c.bf16 %v3737_v54, %v273_v55  ;;  %v3717_v57 = vpop.f32.mrb[0].mxu0  ;;  %v3218_v54 = vld [vmem:[%s5925_s4 + $0x98] sm:$0xff]  ;;  %v3208_v55 = vld [vmem:[%s5924_s1 + $0x68] sm:$0xff] }
  0xe9   :  { %v159_v59 = vpop.f32.mrb[1].mxu0 }
  0xea   :  { %v3740_v58 = vpop.f32.mrb[2].mxu1  ;;  %4437 = vmatprep.subr.bf16.mxu0 %v4436_v56  ;;  %v4452_v61 = vpack.c.bf16 %v3717_v57, %v159_v59  ;;  %v4552_v57 = vpack.c.bf16 %v3218_v54, %v3217_v53  ;;  %v3220_v59 = vld [vmem:[%s5925_s4 + $0xa8] sm:$0xff] }
  0xeb   :  { %v283_v60 = vpop.f32.mrb[3].mxu1  ;;  %4439 = vmatpush3.bf16.msra.mxu0 %v4436_v56  ;;  %v3209_v56 = vld [vmem:[%s5924_s1 + $0x70] sm:$0xff] }
  0xec   :  { %v4440_v62 = vpack.c.bf16 %v3740_v58, %v283_v60  ;;  %v3720_v63 = vpop.f32.mrb[2].mxu0  ;;  %v3219_v58 = vld [vmem:[%s5925_s4 + $0xa0] sm:$0xff]  ;;  %v3210_v60 = vld [vmem:[%s5924_s1 + $0x78] sm:$0xff] }
  0xed   :  { %v169_v1 = vpop.f32.mrb[3].mxu0 }
  0xee   :  { %v3743_v0 = vpop.f32.mrb[4].mxu1  ;;  %4441 = vmatprep.subr.bf16.mxu0 %v4440_v62  ;;  %v4456_v3 = vpack.c.bf16 %v3720_v63, %v169_v1  ;;  %v3222_v63 = vld [vmem:[%s5925_s4 + $0xb8] sm:$0xff]  ;;  %v3223_v1 = vld [vmem:[%s5925_s4 + $0xc0] sm:$0xff] }
  0xef   :  { %v293_v2 = vpop.f32.mrb[5].mxu1  ;;  %4443 = vmatpush3.bf16.msra.mxu0 %v4440_v62  ;;  %v3221_v62 = vld [vmem:[%s5925_s4 + $0xb0] sm:$0xff] }
  0xf0   :  { %v4444_v4 = vpack.c.bf16 %v3743_v0, %v293_v2  ;;  %v3723_v5 = vpop.f32.mrb[4].mxu0  ;;  %v4560_v0 = vpack.c.bf16 %v3222_v63, %v3221_v62  ;;  %v3224_v2 = vld [vmem:[%s5925_s4 + $0xc8] sm:$0xff] }
  0xf1   :  { %v179_v7 = vpop.f32.mrb[5].mxu0 }
  0xf2   :  { %v3746_v6 = vpop.f32.mrb[6].mxu1  ;;  %4445 = vmatprep.subr.bf16.mxu0 %v4444_v4  ;;  %v4460_v9 = vpack.c.bf16 %v3723_v5, %v179_v7  ;;  %v3226_v5 = vld [vmem:[%s5925_s4 + $0xd8] sm:$0xff]  ;;  %v3227_v7 = vld [vmem:[%s5925_s4 + $0xe0] sm:$0xff] }
  0xf3   :  { %v303_v8 = vpop.f32.mrb[7].mxu1  ;;  %4447 = vmatpush3.bf16.msra.mxu0 %v4444_v4  ;;  %v3225_v4 = vld [vmem:[%s5925_s4 + $0xd0] sm:$0xff] }
  0xf4   :  { %v4448_v10 = vpack.c.bf16 %v3746_v6, %v303_v8  ;;  %v3726_v11 = vpop.f32.mrb[6].mxu0  ;;  %v4568_v6 = vpack.c.bf16 %v3226_v5, %v3225_v4  ;;  %v3228_v8 = vld [vmem:[%s5925_s4 + $0xe8] sm:$0xff] }
  0xf5   :  { %v189_v12 = vpop.f32.mrb[7].mxu0  ;;  %v3238_v4 = vld [vmem:[%s5925_s4 + $0x108] sm:$0xff] }
  0xf6   :  { %4449 = vmatprep.subr.bf16.mxu0 %v4448_v10  ;;  %v3801_v13 = vpop.f32.mrb[8].mxu1  ;;  %v4464_v15 = vpack.c.bf16 %v3726_v11, %v189_v12  ;;  %v3230_v11 = vld [vmem:[%s5925_s4 + $0xf8] sm:$0xff] }
  0xf7   :  { %4451 = vmatpush3.bf16.msra.mxu0 %v4448_v10  ;;  %v583_v16 = vpop.f32.mrb[9].mxu1  ;;  %v3229_v10 = vld [vmem:[%s5925_s4 + $0xf0] sm:$0xff] }
  0xf8   :  { %4453 = vmatprep.subr.bf16.mxu0 %v4452_v61  ;;  %v4476_v18 = vpack.c.bf16 %v3801_v13, %v583_v16  ;;  %v4576_v12 = vpack.c.bf16 %v3230_v11, %v3229_v10  ;;  %v966_v13 = vld [vmem:[%s5925_s4 + $0x70] sm:$0xff]  ;;  %v3257_v16 = vld [vmem:[%s5925_s4 + $0x180] sm:$0xff]  ;;  %v3242_v11 = vld [vmem:[%s5925_s4 + $0x128] sm:$0xff] }
  0xf9   :  { %v3241_v10 = vld [vmem:[%s5925_s4 + $0x120] sm:$0xff] }
  0xfa   :  { %3764 = vmatmul.mubr.msk.f32.vlgmr.msra.gmra.mrb[8].mxu0 %vm317_vm1, %v3164_v14  ;;  %v3804_v19 = vpop.f32.mrb[10].mxu1  ;;  %v967_v14 = vld [vmem:[%s5925_s4 + $0x78] sm:$0xff] }
  0xfb   :  { %4455 = vmatpush3.bf16.msra.mxu0 %v4452_v61  ;;  %3766 = vmatprep.mubr.msk.f32.mxu0 %vm317_vm1, %v3165_v17  ;;  %v593_v21 = vpop.f32.mrb[11].mxu1  ;;  %v4556_v61 = vpack.c.bf16 %v3220_v59, %v3219_v58  ;;  %v3258_v17 = vld [vmem:[%s5925_s4 + $0x188] sm:$0xff] }
  0xfc   :  { %4457 = vmatprep.subr.bf16.mxu0 %v4456_v3  ;;  %v4480_v23 = vpack.c.bf16 %v3804_v19, %v593_v21 }
  0xfe   :  { %3767 = vmatmul.mubr.msk.f32.gmra.mrb[10].mxu0 %vm317_vm1, %v3166_v20  ;;  %v3807_v24 = vpop.f32.mrb[12].mxu1 }
  0xff   :  { %4459 = vmatpush3.bf16.msra.mxu0 %v4456_v3  ;;  %3785 = vmatprep.mubr.msk.f32.mxu0 %vm317_vm1, %v198_v22  ;;  %v603_v25 = vpop.f32.mrb[13].mxu1  ;;  %v4564_v3 = vpack.c.bf16 %v3224_v2, %v3223_v1  ;;  %v3232_v1 = vld [vmem:[%s5926_s3 + $0x18] sm:$0xff]  ;;  %v1053_v2 = vld [vmem:[%s5926_s3] sm:$0xff] }
 0x100   :  { %4461 = vmatprep.subr.bf16.mxu0 %v4460_v9  ;;  %v4484_v26 = vpack.c.bf16 %v3807_v24, %v603_v25  ;;  %v3260_v24 = vld [vmem:[%s5925_s4 + $0x198] sm:$0xff] }
 0x102   :  { %v3810_v27 = vpop.f32.mrb[14].mxu1 }
 0x103   :  { %4463 = vmatpush3.bf16.msra.mxu0 %v4460_v9  ;;  %v613_v28 = vpop.f32.mrb[15].mxu1  ;;  %v4572_v9 = vpack.c.bf16 %v3228_v8, %v3227_v7  ;;  %v3240_v7 = vld [vmem:[%s5925_s4 + $0x118] sm:$0xff]  ;;  %v1054_v8 = vld [vmem:[%s5926_s3 + $0x8] sm:$0xff] }
 0x104   :  { %4465 = vmatprep.subr.bf16.mxu0 %v4464_v15  ;;  %v4488_v29 = vpack.c.bf16 %v3810_v27, %v613_v28 }
 0x106   :  { %v3843_v30 = vpop.f32.mrb[16].mxu1 }
 0x107   :  { %4467 = vmatpush3.bf16.msra.mxu0 %v4464_v15  ;;  %v799_v32 = vpop.f32.mrb[17].mxu1  ;;  %v4544_v15 = vpack.c.bf16 %v967_v14, %v966_v13  ;;  %v3243_v13 = vld [vmem:[%s5925_s4 + $0x130] sm:$0xff]  ;;  %v3244_v14 = vld [vmem:[%s5925_s4 + $0x138] sm:$0xff] }
 0x108   :  { %4477 = vmatprep.subr.bf16.mxu0 %v4476_v18  ;;  %v4500_v34 = vpack.c.bf16 %v3843_v30, %v799_v32  ;;  %v3261_v32 = vld [vmem:[%s5925_s4 + $0x1a0] sm:$0xff] }
 0x109   :  { %4545 = vmatprep.subr.bf16.mxu1 %v4544_v15 }
 0x10a   :  { %3786 = vmatmul.mubr.msk.f32.vlgmr.msra.gmra.mrb[8].mxu0 %vm317_vm1, %v199_v31  ;;  %v3846_v35 = vpop.f32.mrb[18].mxu1  ;;  %4547 = vmatpush3.bf16.msra.mxu1 %v4544_v15  ;;  %v4608_v15 = vpack.c.bf16 %v3244_v14, %v3243_v13 }
 0x10b   :  { %4479 = vmatpush3.bf16.msra.mxu0 %v4476_v18  ;;  %3788 = vmatprep.mubr.msk.f32.mxu0 %vm317_vm1, %v200_v33  ;;  %v809_v37 = vpop.f32.mrb[19].mxu1  ;;  %v4636_v18 = vpack.c.bf16 %v3258_v17, %v3257_v16  ;;  %v3262_v33 = vld [vmem:[%s5925_s4 + $0x1a8] sm:$0xff]  ;;  %v3245_v16 = vld [vmem:[%s5925_s4 + $0x140] sm:$0xff] }
 0x10c   :  { %4481 = vmatprep.subr.bf16.mxu0 %v4480_v23  ;;  %v4504_v39 = vpack.c.bf16 %v3846_v35, %v809_v37  ;;  %v3263_v37 = vld [vmem:[%s5925_s4 + $0x1b0] sm:$0xff]  ;;  %v3246_v17 = vld [vmem:[%s5925_s4 + $0x148] sm:$0xff] }
 0x10e   :  { %3789 = vmatmul.mubr.msk.f32.gmra.mrb[10].mxu0 %vm317_vm1, %v201_v36  ;;  %v3849_v40 = vpop.f32.mrb[20].mxu1  ;;  %v4644_v36 = vpack.c.bf16 %v3262_v33, %v3261_v32  ;;  %v3251_v32 = vld [vmem:[%s5925_s4 + $0x170] sm:$0xff]  ;;  %v3252_v33 = vld [vmem:[%s5925_s4 + $0x178] sm:$0xff] }
 0x10f   :  { %4483 = vmatpush3.bf16.msra.mxu0 %v4480_v23  ;;  %3827 = vmatprep.mubr.msk.f32.mxu0 %vm317_vm1, %v3187_v38  ;;  %v819_v41 = vpop.f32.mrb[21].mxu1  ;;  %v3259_v23 = vld [vmem:[%s5925_s4 + $0x190] sm:$0xff]  ;;  %v3264_v38 = vld [vmem:[%s5925_s4 + $0x1b8] sm:$0xff] }
 0x110   :  { %4485 = vmatprep.subr.bf16.mxu0 %v4484_v26  ;;  %v4508_v42 = vpack.c.bf16 %v3849_v40, %v819_v41  ;;  %v4640_v30 = vpack.c.bf16 %v3260_v24, %v3259_v23  ;;  %v3265_v40 = vld [vmem:[%s5925_s4 + $0x1c0] sm:$0xff]  ;;  %v3266_v41 = vld [vmem:[%s5925_s4 + $0x1c8] sm:$0xff] }
 0x112   :  { %v3852_v43 = vpop.f32.mrb[22].mxu1 }
 0x113   :  { %4487 = vmatpush3.bf16.msra.mxu0 %v4484_v26  ;;  %v829_v44 = vpop.f32.mrb[23].mxu1 }
 0x114   :  { %4489 = vmatprep.subr.bf16.mxu0 %v4488_v29  ;;  %v4512_v45 = vpack.c.bf16 %v3852_v43, %v829_v44  ;;  %v3267_v43 = vld [vmem:[%s5925_s4 + $0x1d0] sm:$0xff]  ;;  %v3268_v44 = vld [vmem:[%s5925_s4 + $0x1d8] sm:$0xff] }
 0x117   :  { %4491 = vmatpush3.bf16.msra.mxu0 %v4488_v29 }
 0x118   :  { %4501 = vmatprep.subr.bf16.mxu0 %v4500_v34 }
 0x11a   :  { %3828 = vmatmul.mubr.msk.f32.vlgmr.msra.gmra.mrb[8].mxu0 %vm317_vm1, %v3188_v46  ;;  %v3269_v46 = vld [vmem:[%s5925_s4 + $0x1e0] sm:$0xff] }
 0x11b   :  { %4503 = vmatpush3.bf16.msra.mxu0 %v4500_v34  ;;  %3830 = vmatprep.mubr.msk.f32.mxu0 %vm317_vm1, %v3189_v47  ;;  %v3270_v47 = vld [vmem:[%s5925_s4 + $0x1e8] sm:$0xff] }
 0x11c   :  { %4505 = vmatprep.subr.bf16.mxu0 %v4504_v39 }
 0x11e   :  { %3831 = vmatmul.mubr.msk.f32.gmra.mrb[10].mxu0 %vm317_vm1, %v3190_v48  ;;  %v4660_v48 = vpack.c.bf16 %v3270_v47, %v3269_v46  ;;  %v1712_v46 = vld [vmem:[%s5927_s7 + $0x38] sm:$0xff] }
 0x11f   :  { %4507 = vmatpush3.bf16.msra.mxu0 %v4504_v39  ;;  %3869 = vmatprep.mubr.msk.f32.mxu0 %vm317_vm1, %v3207_v49  ;;  %v4648_v39 = vpack.c.bf16 %v3264_v38, %v3263_v37  ;;  %v3271_v49 = vld [vmem:[%s5925_s4 + $0x1f0] sm:$0xff]  ;;  %v3253_v37 = vld [vmem:[%s5926_s3 + $0x20] sm:$0xff]  ;;  %v4961_v38 = vmov 0.0|0.0  }
 0x120   :  { %4509 = vmatprep.subr.bf16.mxu0 %v4508_v42  ;;  %v4664_v51 = vpack.c.bf16 %v3272_v50, %v3271_v49 }
 0x123   :  { %4511 = vmatpush3.bf16.msra.mxu0 %v4508_v42  ;;  %v4652_v42 = vpack.c.bf16 %v3266_v41, %v3265_v40  ;;  %v1708_v40 = vld [vmem:[%s5927_s7 + $0x18] sm:$0xff] }
 0x124   :  { %4513 = vmatprep.subr.bf16.mxu0 %v4512_v45 }
 0x127   :  { %4515 = vmatpush3.bf16.msra.mxu0 %v4512_v45  ;;  %v4656_v45 = vpack.c.bf16 %v3268_v44, %v3267_v43  ;;  %v1710_v43 = vld [vmem:[%s5927_s7 + $0x28] sm:$0xff] }
 0x128   :  { %4549 = vmatprep.subr.bf16.mxu0 %v4548_v52 }
 0x12a   :  { %3870 = vmatmul.mubr.msk.f32.vlgmr.msra.gmra.mrb[8].mxu0 %vm317_vm1, %v3208_v55 }
 0x12b   :  { %3872 = vmatprep.mubr.msk.f32.mxu0 %vm317_vm1, %v3209_v56  ;;  %4551 = vmatpush3.bf16.msra.mxu0 %v4548_v52  ;;  %v3231_v52 = vld [vmem:[%s5926_s3 + $0x10] sm:$0xff] }
 0x12c   :  { %4553 = vmatprep.subr.bf16.mxu0 %v4552_v57 }
 0x12e   :  { %3873 = vmatmul.mubr.msk.f32.gmra.mrb[10].mxu0 %vm317_vm1, %v3210_v60 }
 0x12f   :  { %4555 = vmatpush3.bf16.msra.mxu0 %v4552_v57 }
 0x130   :  { %4557 = vmatprep.subr.bf16.mxu0 %v4556_v61 }
 0x133   :  { %4559 = vmatpush3.bf16.msra.mxu0 %v4556_v61 }
 0x134   :  { %4561 = vmatprep.subr.bf16.mxu0 %v4560_v0 }
 0x137   :  { %4563 = vmatpush3.bf16.msra.mxu0 %v4560_v0 }
 0x138   :  { %4565 = vmatprep.subr.bf16.mxu0 %v4564_v3 }
 0x13b   :  { %4567 = vmatpush3.bf16.msra.mxu0 %v4564_v3  ;;  %v3237_v3 = vld [vmem:[%s5925_s4 + $0x100] sm:$0xff] }
 0x13c   :  { %4569 = vmatprep.subr.bf16.mxu0 %v4568_v6  ;;  %v4596_v5 = vpack.c.bf16 %v3238_v4, %v3237_v3  ;;  %v1720_v3 = vld [vmem:[%s5927_s7 + $0x78] sm:$0xff] }
 0x13f   :  { %4571 = vmatpush3.bf16.msra.mxu0 %v4568_v6  ;;  %v3239_v6 = vld [vmem:[%s5925_s4 + $0x110] sm:$0xff] }
 0x140   :  { %4573 = vmatprep.subr.bf16.mxu0 %v4572_v9 }
 0x143   :  { %4575 = vmatpush3.bf16.msra.mxu0 %v4572_v9  ;;  %v4600_v9 = vpack.c.bf16 %v3240_v7, %v3239_v6 }
 0x144   :  { %4577 = vmatprep.subr.bf16.mxu0 %v4576_v12 }
 0x147   :  { %4579 = vmatpush3.bf16.msra.mxu0 %v4576_v12  ;;  %v4604_v12 = vpack.c.bf16 %v3242_v11, %v3241_v10 }
 0x148   :  { %4637 = vmatprep.subr.bf16.mxu0 %v4636_v18 }
 0x1fd   :  { %v3871_v19 = vpop.f32.mrb[8].mxu0 }
 0x1fe   :  { %v945_v20 = vmul.f32 0.05, %v3871_v19  ;;  %v921_v21 = vpop.f32.mrb[9].mxu0 }
 0x1ff   :  { %v944_v22 = vmul.f32 0.05, %v921_v21 }
 0x200   :  { %v5338_v27 = vmax.f32 %v3871_v19, %v945_v20  ;;  %v3247_v19 = vld [vmem:[%s5925_s4 + $0x150] sm:$0xff]  ;;  %v3248_v20 = vld [vmem:[%s5925_s4 + $0x158] sm:$0xff] }
 0x201   :  { %v5336_v25 = vmax.f32 %v921_v21, %v944_v22  ;;  %v3874_v26 = vpop.f32.mrb[10].mxu0  ;;  %v4616_v24 = vpack.c.bf16 %v3248_v20, %v3247_v19 }
 0x202   :  { %v947_v28 = vmul.f32 0.05, %v3874_v26  ;;  %v931_v29 = vpop.f32.mrb[11].mxu0 }
 0x203   :  { %v946_v31 = vmul.f32 0.05, %v931_v29  ;;  %3907 = vmatprep.mubr.f32.mxu1 %v5336_v25  ;;  %3945 = vmatprep.mubr.f32.mxu0 %v5336_v25 }
 0x204   :  { %3908 = vmatmul.mubr.f32.vlgmr.msra.gmra.mrb[24].mxu1 %v5338_v27  ;;  %3946 = vmatmul.mubr.f32.vlgmr.msra.gmra.mrb[12].mxu0 %v5338_v27  ;;  %v5352_v35 = vmax.f32 %v3874_v26, %v947_v28  ;;  %v3250_v26 = vld [vmem:[%s5925_s4 + $0x168] sm:$0xff] }
 0x205   :  { %v5350_v34 = vmax.f32 %v931_v29, %v946_v31  ;;  %4639 = vmatpush3.bf16.msra.mxu0 %v4636_v18  ;;  %v4612_v18 = vpack.c.bf16 %v3246_v17, %v3245_v16 }
 0x206   :  { %4641 = vmatprep.subr.bf16.mxu0 %v4640_v30 }
 0x207   :  { %3910 = vmatprep.mubr.f32.mxu1 %v5350_v34  ;;  %3948 = vmatprep.mubr.f32.mxu0 %v5350_v34 }
 0x208   :  { %3911 = vmatmul.mubr.f32.gmra.mrb[26].mxu1 %v5352_v35  ;;  %3949 = vmatmul.mubr.f32.gmra.mrb[14].mxu0 %v5352_v35 }
 0x209   :  { %4643 = vmatpush3.bf16.msra.mxu0 %v4640_v30  ;;  %4054 = vmatprep.mubr.f32.mxu0 %v5336_v25 }
 0x20a   :  { %4645 = vmatprep.subr.bf16.mxu0 %v4644_v36  ;;  %3959 = vmatprep.mubr.msk.f32.mxu1 %vm68_vm0, %v3231_v52 }
 0x20d   :  { %4647 = vmatpush3.bf16.msra.mxu0 %v4644_v36  ;;  %v4624_v36 = vpack.c.bf16 %v3252_v33, %v3251_v32  ;;  %v2048_v32 = vld [vmem:[%s5929_s10 + $0x8] sm:$0xff] }
 0x20e   :  { %4649 = vmatprep.subr.bf16.mxu0 %v4648_v39 }
 0x211   :  { %4651 = vmatpush3.bf16.msra.mxu0 %v4648_v39  ;;  %v1705_v39 = vld [vmem:[%s5927_s7] sm:$0xff] }
 0x212   :  { %4653 = vmatprep.subr.bf16.mxu0 %v4652_v42 }
 0x215   :  { %4655 = vmatpush3.bf16.msra.mxu0 %v4652_v42  ;;  %v1709_v42 = vld [vmem:[%s5927_s7 + $0x20] sm:$0xff] }
 0x216   :  { %4657 = vmatprep.subr.bf16.mxu0 %v4656_v45  ;;  %v4683_v44 = vpack.c.bf16 %v1710_v43, %v1709_v42 }
 0x219   :  { %4659 = vmatpush3.bf16.msra.mxu0 %v4656_v45  ;;  %v1711_v45 = vld [vmem:[%s5927_s7 + $0x30] sm:$0xff] }
 0x21a   :  { %4661 = vmatprep.subr.bf16.mxu0 %v4660_v48  ;;  %v4686_v47 = vpack.c.bf16 %v1712_v46, %v1711_v45  ;;  %v2049_v45 = vld [vmem:[%s5929_s10 + $0x10] sm:$0xff]  ;;  %v2050_v46 = vld [vmem:[%s5929_s10 + $0x18] sm:$0xff] }
 0x21d   :  { %4663 = vmatpush3.bf16.msra.mxu0 %v4660_v48 }
 0x21e   :  { %4665 = vmatprep.subr.bf16.mxu0 %v4664_v51 }
 0x221   :  { %4667 = vmatpush3.bf16.msra.mxu0 %v4664_v51 }
 0x222   :  { %4676 = vmatprep.subr.bf16.mxu0 %v4961_v38 }
 0x224   :  { %4055 = vmatmul.mubr.f32.vlgmr.msra.gmra.mrb[16].mxu0 %v5338_v27 }
 0x225   :  { %4057 = vmatprep.mubr.f32.mxu0 %v5350_v34 }
 0x228   :  { %4058 = vmatmul.mubr.f32.gmra.mrb[18].mxu0 %v5352_v35 }
 0x2d7   :  { %v3909_v53 = vpop.f32.mrb[24].mxu1  ;;  %v3947_v54 = vpop.f32.mrb[12].mxu0 }
 0x2d8   :  { %v1034_v55 = vpop.f32.mrb[25].mxu1  ;;  %v1138_v56 = vpop.f32.mrb[13].mxu0 }
 0x2d9   :  { %v4588_v57 = vpack.c.bf16 %v3909_v53, %v1034_v55  ;;  %v4580_v58 = vpack.c.bf16 %v3947_v54, %v1138_v56  ;;  %v3254_v54 = vld [vmem:[%s5926_s3 + $0x28] sm:$0xff]  ;;  %v3273_v55 = vld [vmem:[%s5926_s3 + $0x30] sm:$0xff]  ;;  %v3274_v56 = vld [vmem:[%s5926_s3 + $0x38] sm:$0xff] }
 0x2db   :  { %v3912_v59 = vpop.f32.mrb[26].mxu1  ;;  %v3950_v60 = vpop.f32.mrb[14].mxu0  ;;  %4581 = vmatprep.subr.bf16.mxu1 %v4580_v58 }
 0x2dc   :  { %v1044_v61 = vpop.f32.mrb[27].mxu1  ;;  %v1148_v62 = vpop.f32.mrb[15].mxu0  ;;  %4583 = vmatpush3.bf16.msra.mxu1 %v4580_v58  ;;  %v1714_v58 = vld [vmem:[%s5927_s7 + $0x48] sm:$0xff] }
 0x2dd   :  { %v4592_v63 = vpack.c.bf16 %v3912_v59, %v1044_v61  ;;  %v4584_v0 = vpack.c.bf16 %v3950_v60, %v1148_v62  ;;  %v1715_v60 = vld [vmem:[%s5927_s7 + $0x50] sm:$0xff]  ;;  %v1716_v61 = vld [vmem:[%s5927_s7 + $0x58] sm:$0xff] }
 0x2de   :  { %v4692_v62 = vpack.c.bf16 %v1716_v61, %v1715_v60  ;;  %v3284_v60 = vld [vmem:[%s5929_s10 + $0xa8] sm:$0xff]  ;;  %v2053_v61 = vld [vmem:[%s5929_s10 + $0x30] sm:$0xff] }
 0x2df   :  { %4585 = vmatprep.subr.bf16.mxu1 %v4584_v0 }
 0x2e0   :  { %4587 = vmatpush3.bf16.msra.mxu1 %v4584_v0  ;;  %v1718_v0 = vld [vmem:[%s5927_s7 + $0x68] sm:$0xff] }
 0x2e1   :  { %4589 = vmatprep.subr.bf16.mxu1 %v4588_v57 }
 0x2e3   :  { %3960 = vmatmul.mubr.msk.f32.vlgmr.msra.gmra.mrb[28].mxu1 %vm68_vm0, %v3232_v1 }
 0x2e4   :  { %4591 = vmatpush3.bf16.msra.mxu1 %v4588_v57  ;;  %3970 = vmatprep.mubr.msk.f32.mxu1 %vm68_vm0, %v1053_v2  ;;  %v1713_v57 = vld [vmem:[%s5927_s7 + $0x40] sm:$0xff]  ;;  %v1719_v2 = vld [vmem:[%s5927_s7 + $0x70] sm:$0xff] }
 0x2e5   :  { %4593 = vmatprep.subr.bf16.mxu1 %v4592_v63  ;;  %v4689_v59 = vpack.c.bf16 %v1714_v58, %v1713_v57  ;;  %v4698_v4 = vpack.c.bf16 %v1720_v3, %v1719_v2  ;;  %v3283_v58 = vld [vmem:[%s5929_s10 + $0xa0] sm:$0xff]  ;;  %v3286_v2 = vld [vmem:[%s5929_s10 + $0xb8] sm:$0xff] }
 0x2e6   :  { %v2055_v3 = vld [vmem:[%s5929_s10 + $0x40] sm:$0xff] }
 0x2e8   :  { %4595 = vmatpush3.bf16.msra.mxu1 %v4592_v63  ;;  %v1717_v63 = vld [vmem:[%s5927_s7 + $0x60] sm:$0xff] }
 0x2e9   :  { %4597 = vmatprep.subr.bf16.mxu1 %v4596_v5  ;;  %v4695_v1 = vpack.c.bf16 %v1718_v0, %v1717_v63  ;;  %v4770_v63 = vpack.c.bf16 %v3284_v60, %v3283_v58  ;;  %v3285_v0 = vld [vmem:[%s5929_s10 + $0xb0] sm:$0xff]  ;;  %v3307_v60 = vld [vmem:[%s5929_s10 + $0x148] sm:$0xff] }
 0x2eb   :  { %3971 = vmatmul.mubr.msk.f32.vlgmr.msra.gmra.mrb[28].mxu1 %vm68_vm0, %v1054_v8 }
 0x2ec   :  { %4599 = vmatpush3.bf16.msra.mxu1 %v4596_v5  ;;  %4005 = vmatprep.mubr.f32.mxu1 %v5336_v25  ;;  %v3249_v25 = vld [vmem:[%s5925_s4 + $0x160] sm:$0xff]  ;;  %v4963_v5 = vmov 0.0  }
 0x2ed   :  { %4601 = vmatprep.subr.bf16.mxu1 %v4600_v9  ;;  %v4620_v31 = vpack.c.bf16 %v3250_v26, %v3249_v25  ;;  %4103 = vmatprep.mubr.msk.f32.mxu0 %vm4962_vm2, %v4963_v5  ;;  %v1883_v25 = vld [vmem:[%s5928_s8 + $0x8] sm:$0xff] }
 0x2f0   :  { %4603 = vmatpush3.bf16.msra.mxu1 %v4600_v9 }
 0x2f1   :  { %4605 = vmatprep.subr.bf16.mxu1 %v4604_v12 }
 0x2f4   :  { %4607 = vmatpush3.bf16.msra.mxu1 %v4604_v12 }
 0x2f5   :  { %4609 = vmatprep.subr.bf16.mxu1 %v4608_v15 }
 0x2f7   :  { %v4056_v21 = vpop.f32.mrb[16].mxu0 }
 0x2f8   :  { %v1593_v22 = vpop.f32.mrb[17].mxu0  ;;  %4611 = vmatpush3.bf16.msra.mxu1 %v4608_v15 }
 0x2f9   :  { %v4668_v23 = vpack.c.bf16 %v4056_v21, %v1593_v22  ;;  %4613 = vmatprep.subr.bf16.mxu1 %v4612_v18 }
 0x2fb   :  { %v4059_v28 = vpop.f32.mrb[18].mxu0 }
 0x2fc   :  { %v1603_v29 = vpop.f32.mrb[19].mxu0  ;;  %4615 = vmatpush3.bf16.msra.mxu1 %v4612_v18 }
 0x2fd   :  { %v4672_v30 = vpack.c.bf16 %v4059_v28, %v1603_v29  ;;  %4617 = vmatprep.subr.bf16.mxu1 %v4616_v24  ;;  %v3279_v28 = vld [vmem:[%s5929_s10 + $0x80] sm:$0xff]  ;;  %v3280_v29 = vld [vmem:[%s5929_s10 + $0x88] sm:$0xff] }
 0x300   :  { %4619 = vmatpush3.bf16.msra.mxu1 %v4616_v24  ;;  %v1882_v24 = vld [vmem:[%s5928_s8] sm:$0xff] }
 0x301   :  { %4621 = vmatprep.subr.bf16.mxu1 %v4620_v31  ;;  %v4725_v26 = vpack.c.bf16 %v1883_v25, %v1882_v24  ;;  %v3293_v25 = vld [vmem:[%s5929_s10 + $0xf0] sm:$0xff] }
 0x304   :  { %4623 = vmatpush3.bf16.msra.mxu1 %v4620_v31  ;;  %v4762_v31 = vpack.c.bf16 %v3280_v29, %v3279_v28  ;;  %v2061_v29 = vld [vmem:[%s5929_s10 + $0x70] sm:$0xff] }
 0x305   :  { %4625 = vmatprep.subr.bf16.mxu1 %v4624_v36 }
 0x308   :  { %4627 = vmatpush3.bf16.msra.mxu1 %v4624_v36 }
 0x30b   :  { %4006 = vmatmul.mubr.f32.vlgmr.msra.gmra.mrb[30].mxu1 %v5338_v27  ;;  %v1706_v27 = vld [vmem:[%s5927_s7 + $0x8] sm:$0xff] }
 0x30c   :  { %4008 = vmatprep.mubr.f32.mxu1 %v5350_v34  ;;  %v1707_v34 = vld [vmem:[%s5927_s7 + $0x10] sm:$0xff] }
 0x30d   :  { %v4680_v41 = vpack.c.bf16 %v1708_v40, %v1707_v34 }
 0x30f   :  { %4009 = vmatmul.mubr.f32.gmra.mrb[32].mxu1 %v5352_v35  ;;  %v4677_v35 = vpack.c.bf16 %v1706_v27, %v1705_v39 }
 0x310   :  { %4019 = vmatprep.mubr.msk.f32.mxu1 %vm68_vm0, %v3253_v37 }
 0x311   :  { %4678 = vmatpush3.bf16.msra.mxu0 %v4677_v35 }
 0x312   :  { %4679 = vmatprep.subr.bf16.mxu0 %v4961_v38 }
 0x315   :  { %4681 = vmatpush3.bf16.msra.mxu0 %v4680_v41 }
 0x316   :  { %4682 = vmatprep.subr.bf16.mxu0 %v4961_v38 }
 0x319   :  { %4684 = vmatpush3.bf16.msra.mxu0 %v4683_v44 }
 0x31a   :  { %4685 = vmatprep.subr.bf16.mxu0 %v4961_v38 }
 0x31d   :  { %4687 = vmatpush3.bf16.msra.mxu0 %v4686_v47 }
 0x31e   :  { %4688 = vmatprep.subr.bf16.mxu0 %v4961_v38 }
 0x321   :  { %4690 = vmatpush3.bf16.msra.mxu0 %v4689_v59 }
 0x322   :  { %4691 = vmatprep.subr.bf16.mxu0 %v4961_v38 }
 0x325   :  { %4693 = vmatpush3.bf16.msra.mxu0 %v4692_v62 }
 0x326   :  { %4694 = vmatprep.subr.bf16.mxu0 %v4961_v38 }
 0x329   :  { %4696 = vmatpush3.bf16.msra.mxu0 %v4695_v1 }
 0x32a   :  { %4697 = vmatprep.subr.bf16.mxu0 %v4961_v38 }
 0x32d   :  { %4699 = vmatpush3.bf16.msra.mxu0 %v4698_v4 }
 0x32e   :  { %4724 = vmatprep.subr.bf16.mxu0 %v4961_v38 }
 0x3de   :  { %v4007_v48 = vpop.f32.mrb[30].mxu1 }
 0x3df   :  { %v1405_v49 = vpop.f32.mrb[31].mxu1 }
 0x3e0   :  { %v4628_v50 = vpack.c.bf16 %v4007_v48, %v1405_v49  ;;  %v1879_v49 = vld [vmem:[%s5931_s6] sm:$0x1] }
 0x3e2   :  { %v4010_v51 = vpop.f32.mrb[32].mxu1  ;;  %4629 = vmatprep.subr.bf16.mxu1 %v4628_v50 }
 0x3e3   :  { %v1415_v52 = vpop.f32.mrb[33].mxu1  ;;  %4631 = vmatpush3.bf16.msra.mxu1 %v4628_v50  ;;  %v3281_v50 = vld [vmem:[%s5929_s10 + $0x90] sm:$0xff] }
 0x3e4   :  { %v4632_v53 = vpack.c.bf16 %v4010_v51, %v1415_v52  ;;  %v4734_v51 = vpack.c.bf16 %v2050_v46, %v2049_v45  ;;  %v3282_v52 = vld [vmem:[%s5929_s10 + $0x98] sm:$0xff] }
 0x3e5   :  { %v4766_v57 = vpack.c.bf16 %v3282_v52, %v3281_v50  ;;  %v3300_v50 = vld [vmem:[%s5929_s10 + $0x110] sm:$0xff] }
 0x3e6   :  { %4633 = vmatprep.subr.bf16.mxu1 %v4632_v53 }
 0x3e7   :  { %4635 = vmatpush3.bf16.msra.mxu1 %v4632_v53  ;;  %v2051_v53 = vld [vmem:[%s5929_s10 + $0x20] sm:$0xff] }
 0x3e8   :  { %4669 = vmatprep.subr.bf16.mxu1 %v4668_v23 }
 0x3ea   :  { %4020 = vmatmul.mubr.msk.f32.vlgmr.msra.gmra.mrb[28].mxu1 %vm68_vm0, %v3254_v54  ;;  %v2052_v54 = vld [vmem:[%s5929_s10 + $0x28] sm:$0xff] }
 0x3eb   :  { %4671 = vmatpush3.bf16.msra.mxu1 %v4668_v23  ;;  %4068 = vmatprep.mubr.msk.f32.mxu1 %vm68_vm0, %v3273_v55 }
 0x3ec   :  { %4673 = vmatprep.subr.bf16.mxu1 %v4672_v30 }
 0x3ef   :  { %4675 = vmatpush3.bf16.msra.mxu1 %v4672_v30  ;;  %v2047_v30 = vld [vmem:[%s5929_s10] sm:$0xff] }
 0x3f0   :  { %4700 = vmatprep.subr.bf16.mxu1 %v4961_v38  ;;  %v4730_v33 = vpack.c.bf16 %v2048_v32, %v2047_v30  ;;  %v2062_v30 = vld [vmem:[%s5929_s10 + $0x78] sm:$0xff]  ;;  %v3298_v32 = vld [vmem:[%s5929_s10 + $0x100] sm:$0xff] }
 0x3f2   :  { %4069 = vmatmul.mubr.msk.f32.vlgmr.msra.gmra.mrb[28].mxu1 %vm68_vm0, %v3274_v56 }
 0x3f3   :  { %4702 = vmatpush3.bf16.msra.mxu1 %v4677_v35  ;;  %4138 = vmatprep.mubr.msk.f32.mxu1 %vm4962_vm2, %v4963_v5 }
 0x3f4   :  { %4703 = vmatprep.subr.bf16.mxu1 %v4961_v38 }
 0x3f7   :  { %4705 = vmatpush3.bf16.msra.mxu1 %v4680_v41 }
 0x3f8   :  { %4706 = vmatprep.subr.bf16.mxu1 %v4961_v38 }
 0x3fb   :  { %4708 = vmatpush3.bf16.msra.mxu1 %v4683_v44  ;;  %v1875_v44 = vld [vmem:[%s5930_s5] sm:$0x1] }
 0x3fc   :  { %4709 = vmatprep.subr.bf16.mxu1 %v4961_v38 }
 0x3ff   :  { %4711 = vmatpush3.bf16.msra.mxu1 %v4686_v47 }
 0x400   :  { %4712 = vmatprep.subr.bf16.mxu1 %v4961_v38 }
 0x403   :  { %4714 = vmatpush3.bf16.msra.mxu1 %v4689_v59  ;;  %v4738_v59 = vpack.c.bf16 %v2052_v54, %v2051_v53  ;;  %v3302_v53 = vld [vmem:[%s5929_s10 + $0x120] sm:$0xff]  ;;  %v3303_v54 = vld [vmem:[%s5929_s10 + $0x128] sm:$0xff] }
 0x404   :  { %4715 = vmatprep.subr.bf16.mxu1 %v4961_v38 }
 0x407   :  { %4717 = vmatpush3.bf16.msra.mxu1 %v4692_v62  ;;  %v2054_v62 = vld [vmem:[%s5929_s10 + $0x38] sm:$0xff] }
 0x408   :  { %4718 = vmatprep.subr.bf16.mxu1 %v4961_v38 }
 0x40b   :  { %4720 = vmatpush3.bf16.msra.mxu1 %v4695_v1  ;;  %v4742_v1 = vpack.c.bf16 %v2054_v62, %v2053_v61  ;;  %v3308_v62 = vld [vmem:[%s5929_s10 + $0x150] sm:$0xff] }
 0x40c   :  { %4721 = vmatprep.subr.bf16.mxu1 %v4961_v38 }
 0x40f   :  { %4723 = vmatpush3.bf16.msra.mxu1 %v4698_v4  ;;  %v2056_v4 = vld [vmem:[%s5929_s10 + $0x48] sm:$0xff] }
 0x410   :  { %4727 = vmatprep.subr.bf16.mxu1 %v4961_v38 }
 0x4c5   :  { %v5546_v6 = vpop.f32.mrb[28].mxu1 }
 0x4c6   :  { %v1792_v7 = vmul.f32 %v5546_v6, %v5546_v6  ;;  %v5550_v8 = vpop.f32.mrb[29].mxu1 }
 0x4c7   :  { %v1698_v9 = vadd.f32 %v5546_v6, %v5550_v8  ;;  %v1791_v10 = vmul.f32 %v5550_v8, %v5550_v8 }
 0x4c9   :  { %v1699_v11 = vrot.slane %v1698_v9, 4  ;;  %v1793_v12 = vadd.f32 %v1792_v7, %v1791_v10  ;;  %v4774_v7 = vpack.c.bf16 %v3286_v2, %v3285_v0  ;;  %v3287_v10 = vld [vmem:[%s5929_s10 + $0xc0] sm:$0xff]  ;;  %v3311_v2 = vld [vmem:[%s5929_s10 + $0x168] sm:$0xff] }
 0x4cb   :  { %v1700_v13 = vadd.f32 %v1699_v11, %v1698_v9  ;;  %v1794_v14 = vrot.slane %v1793_v12, 4  ;;  %v4746_v9 = vpack.c.bf16 %v2056_v4, %v2055_v3  ;;  %v3288_v11 = vld [vmem:[%s5929_s10 + $0xc8] sm:$0xff]  ;;  %v3312_v4 = vld [vmem:[%s5929_s10 + $0x170] sm:$0xff] }
 0x4cd   :  { %v1701_v15 = vrot.slane %v1700_v13, 2  ;;  %v1795_v16 = vadd.f32 %v1794_v14, %v1793_v12  ;;  %v4778_v12 = vpack.c.bf16 %v3288_v11, %v3287_v10  ;;  %v3290_v14 = vld [vmem:[%s5929_s10 + $0xd8] sm:$0xff] }
 0x4cf   :  { %v1702_v17 = vadd.f32 %v1701_v15, %v1700_v13  ;;  %v1796_v18 = vrot.slane %v1795_v16, 2  ;;  %v3289_v13 = vld [vmem:[%s5929_s10 + $0xd0] sm:$0xff] }
 0x4d0   :  { %v4782_v15 = vpack.c.bf16 %v3290_v14, %v3289_v13 }
 0x4d1   :  { %v1703_v19 = vrot.slane %v1702_v17, 1  ;;  %v1797_v20 = vadd.f32 %v1796_v18, %v1795_v16  ;;  %v2057_v16 = vld [vmem:[%s5929_s10 + $0x50] sm:$0xff] }
 0x4d3   :  { %v1704_v21 = vadd.f32 %v1703_v19, %v1702_v17  ;;  %v1798_v22 = vrot.slane %v1797_v20, 1  ;;  %v2058_v17 = vld [vmem:[%s5929_s10 + $0x58] sm:$0xff]  ;;  %v3291_v19 = vld [vmem:[%s5929_s10 + $0xe0] sm:$0xff] }
 0x4d4   :  { %v4750_v18 = vpack.c.bf16 %v2058_v17, %v2057_v16  ;;  %v3295_v16 = vld [vmem:[%s5932_s9 + $0x8] sm:$0xff]  ;;  %v2138_v17 = vld [vmem:[%s5932_s9] sm:$0xff] }
 0x4d5   :  { %4104 = vmatmul.mubr.f32.vlgmr.msra.gmra.mrb[20].mxu0 %v1704_v21  ;;  %v1799_v23 = vadd.f32 %v1798_v22, %v1797_v20  ;;  %v3292_v20 = vld [vmem:[%s5929_s10 + $0xe8] sm:$0xff]  ;;  %v2059_v22 = vld [vmem:[%s5929_s10 + $0x60] sm:$0xff] }
 0x4d6   :  { %4145 = vmatprep.mubr.msk.f32.mxu0 %vm4962_vm2, %v4963_v5  ;;  %4726 = vmatpush3.bf16.msra.mxu0 %v4725_v26  ;;  %v4786_v21 = vpack.c.bf16 %v3292_v20, %v3291_v19  ;;  %v3317_v19 = vld [vmem:[%s5929_s10 + $0x188] sm:$0xff] }
 0x4d7   :  { %4139 = vmatmul.mubr.f32.vlgmr.msra.gmra.mrb[34].mxu1 %v1799_v23  ;;  %4731 = vmatprep.subr.bf16.mxu0 %v4730_v33  ;;  %v2060_v23 = vld [vmem:[%s5929_s10 + $0x68] sm:$0xff] }
 0x4d8   :  { %4152 = vmatprep.mubr.msk.f32.mxu1 %vm4962_vm2, %v4963_v5  ;;  %4729 = vmatpush3.bf16.msra.mxu1 %v4725_v26  ;;  %v4754_v24 = vpack.c.bf16 %v2060_v23, %v2059_v22  ;;  %v3294_v26 = vld [vmem:[%s5929_s10 + $0xf8] sm:$0xff] }
 0x4d9   :  { %4763 = vmatprep.subr.bf16.mxu1 %v4762_v31  ;;  %v4790_v28 = vpack.c.bf16 %v3294_v26, %v3293_v25  ;;  %v3319_v25 = vld [vmem:[%s5929_s10 + $0x198] sm:$0xff]  ;;  %v3314_v26 = vld [vmem:[%s5932_s9 + $0x10] sm:$0xff] }
 0x5a8   :  { %v1787_v36 = vpop.f32.mrb[20].mxu0 }
 0x5a9   :  { %v1870_v37 = vmul.f32 0.0078125, %v1787_v36  ;;  %v4105_v39 = vpop.f32.mrb[21].mxu0 }
 0x5aa   :  { %v1866_v27 = vpop.f32.mrb[34].mxu1 }
 0x5ab   :  { %v1872_v34 = vmul.f32 %v1870_v37, %v1870_v37  ;;  %v1871_v35 = vmul.f32 0.0078125, %v1866_v27  ;;  %v4140_v40 = vpop.f32.mrb[35].mxu1 }
 0x5ad   :  { %v1873_v41 = vsub.f32 %v1871_v35, %v1872_v34 }
 0x5af   :  { %v1874_v42 = vmax.f32 %v1873_v41, 0.0 }
 0x5b1   :  { %v1876_v43 = vadd.f32 1e-05, %v1874_v42 }
 0x5b3   :  { %4957 = vrsqrt.f32 %v1876_v43 }
 0x5bd   :  { %v4958_v47 = vpop.eup %4957 }
 0x5be   :  { %v1878_v48 = vmul.f32 %v4958_v47, %v1875_v44 }
 0x5c0   :  { %4146 = vmatmul.mubr.msk.f32.vlgmr.msra.gmra.mrb[22].mxu0 %vm1884_vm3, %v1878_v48  ;;  %v1880_v55 = vmul.f32 %v1878_v48, %v1870_v37  ;;  %v2031_v37 = vlaneseq }
 0x5c1   :  { %4733 = vmatpush3.bf16.msra.mxu0 %v4730_v33  ;;  %v3299_v33 = vld [vmem:[%s5929_s10 + $0x108] sm:$0xff] }
 0x5c2   :  { %v1881_v56 = vsub.f32 %v1879_v49, %v1880_v55  ;;  %4735 = vmatprep.subr.bf16.mxu0 %v4734_v51  ;;  %v4800_v36 = vpack.c.bf16 %v3299_v33, %v3298_v32  ;;  %v2032_v39 = vshrl.u32 %v2031_v37, 7  ;;  %v4808_v55 = vpack.c.bf16 %v3303_v54, %v3302_v53  ;;  %v3322_v32 = vld [vmem:[%s5929_s10 + $0x1b0] sm:$0xff]  ;;  %v3323_v33 = vld [vmem:[%s5929_s10 + $0x1b8] sm:$0xff]  ;;  %v3324_v37 = vld [vmem:[%s5929_s10 + $0x1c0] sm:$0xff] }
 0x5c3   :  { %v2726_v53 = vld [vmem:[%s5933_s13 + $0x28] sm:$0xff] }
 0x5c4   :  { %4153 = vmatmul.mubr.msk.f32.vlgmr.msra.gmra.mrb[36].mxu1 %vm1884_vm3, %v1881_v56  ;;  %v5677_v27 = vsub.s32 0, %v2032_v39  ;;  %v3304_v56 = vld [vmem:[%s5929_s10 + $0x130] sm:$0xff]  ;;  %v3325_v39 = vld [vmem:[%s5929_s10 + $0x1c8] sm:$0xff] }
 0x5c5   :  { %4765 = vmatpush3.bf16.msra.mxu1 %v4762_v31  ;;  %4737 = vmatpush3.bf16.msra.mxu0 %v4734_v51  ;;  %v4758_v31 = vpack.c.bf16 %v2062_v30, %v2061_v29  ;;  %v3301_v51 = vld [vmem:[%s5929_s10 + $0x118] sm:$0xff]  ;;  %v3320_v29 = vld [vmem:[%s5929_s10 + $0x1a0] sm:$0xff]  ;;  %v3321_v30 = vld [vmem:[%s5929_s10 + $0x1a8] sm:$0xff] }
 0x5c6   :  { %4767 = vmatprep.subr.bf16.mxu1 %v4766_v57  ;;  %4739 = vmatprep.subr.bf16.mxu0 %v4738_v59 }
 0x5c9   :  { %4769 = vmatpush3.bf16.msra.mxu1 %v4766_v57  ;;  %4741 = vmatpush3.bf16.msra.mxu0 %v4738_v59  ;;  %v3305_v57 = vld [vmem:[%s5929_s10 + $0x138] sm:$0xff]  ;;  %v3306_v59 = vld [vmem:[%s5929_s10 + $0x140] sm:$0xff] }
 0x5ca   :  { %4771 = vmatprep.subr.bf16.mxu1 %v4770_v63  ;;  %4743 = vmatprep.subr.bf16.mxu0 %v4742_v1  ;;  %v4812_v58 = vpack.c.bf16 %v3305_v57, %v3304_v56  ;;  %v4816_v61 = vpack.c.bf16 %v3307_v60, %v3306_v59  ;;  %v2728_v56 = vld [vmem:[%s5933_s13 + $0x38] sm:$0xff]  ;;  %v2730_v59 = vld [vmem:[%s5933_s13 + $0x48] sm:$0xff] }
 0x5cd   :  { %4773 = vmatpush3.bf16.msra.mxu1 %v4770_v63  ;;  %4745 = vmatpush3.bf16.msra.mxu0 %v4742_v1  ;;  %v3309_v63 = vld [vmem:[%s5929_s10 + $0x158] sm:$0xff]  ;;  %v3310_v1 = vld [vmem:[%s5929_s10 + $0x160] sm:$0xff] }
 0x5ce   :  { %4775 = vmatprep.subr.bf16.mxu1 %v4774_v7  ;;  %4747 = vmatprep.subr.bf16.mxu0 %v4746_v9  ;;  %v4820_v0 = vpack.c.bf16 %v3309_v63, %v3308_v62  ;;  %v4824_v3 = vpack.c.bf16 %v3311_v2, %v3310_v1  ;;  %v2731_v1 = vld [vmem:[%s5933_s13 + $0x50] sm:$0xff]  ;;  %v2732_v2 = vld [vmem:[%s5933_s13 + $0x58] sm:$0xff] }
 0x5d1   :  { %4777 = vmatpush3.bf16.msra.mxu1 %v4774_v7  ;;  %4749 = vmatpush3.bf16.msra.mxu0 %v4746_v9  ;;  %v3313_v7 = vld [vmem:[%s5929_s10 + $0x178] sm:$0xff] }
 0x5d2   :  { %4779 = vmatprep.subr.bf16.mxu1 %v4778_v12  ;;  %4751 = vmatprep.subr.bf16.mxu0 %v4750_v18  ;;  %v4828_v9 = vpack.c.bf16 %v3313_v7, %v3312_v4  ;;  %v2733_v4 = vld [vmem:[%s5933_s13 + $0x60] sm:$0xff]  ;;  %v2734_v7 = vld [vmem:[%s5933_s13 + $0x68] sm:$0xff] }
 0x5d5   :  { %4781 = vmatpush3.bf16.msra.mxu1 %v4778_v12  ;;  %4753 = vmatpush3.bf16.msra.mxu0 %v4750_v18  ;;  %v3316_v18 = vld [vmem:[%s5929_s10 + $0x180] sm:$0xff] }
 0x5d6   :  { %4783 = vmatprep.subr.bf16.mxu1 %v4782_v15  ;;  %4755 = vmatprep.subr.bf16.mxu0 %v4754_v24  ;;  %v4835_v22 = vpack.c.bf16 %v3317_v19, %v3316_v18 }
 0x5d9   :  { %4785 = vmatpush3.bf16.msra.mxu1 %v4782_v15  ;;  %4757 = vmatpush3.bf16.msra.mxu0 %v4754_v24  ;;  %v3318_v24 = vld [vmem:[%s5929_s10 + $0x190] sm:$0xff] }
 0x5da   :  { %4787 = vmatprep.subr.bf16.mxu1 %v4786_v21  ;;  %4759 = vmatprep.subr.bf16.mxu0 %v4758_v31 }
 0x5dd   :  { %4789 = vmatpush3.bf16.msra.mxu1 %v4786_v21  ;;  %4761 = vmatpush3.bf16.msra.mxu0 %v4758_v31  ;;  %v4843_v31 = vpack.c.bf16 %v3321_v30, %v3320_v29  ;;  %v2896_v29 = vld [vmem:[%s5934_s14] sm:$0xff]  ;;  %v2897_v30 = vld [vmem:[%s5934_s14 + $0x8] sm:$0xff] }
 0x5de   :  { %4791 = vmatprep.subr.bf16.mxu1 %v4790_v28  ;;  %4794 = vmatprep.subr.bf16.mxu0 %v4961_v38 }
 0x5e1   :  { %4793 = vmatpush3.bf16.msra.mxu1 %v4790_v28  ;;  %v4839_v28 = vpack.c.bf16 %v3319_v25, %v3318_v24 }
 0x5e2   :  { %4801 = vmatprep.subr.bf16.mxu1 %v4800_v36 }
 0x693   :  { %v1954_v34 = vpop.f32.mrb[22].mxu0 }
 0x694   :  { %v2034_v35 = vrot.slane %v1954_v34, %v5677_v27  ;;  %v4147_v40 = vpop.f32.mrb[23].mxu0  ;;  %v4851_v34 = vpack.c.bf16 %v3325_v39, %v3324_v37 }
 0x695   :  { %v3327_v40 = vld [vmem:[%s5929_s10 + $0x1d8] sm:$0xff] }
 0x696   :  { %v2035_v41 = vmul.f32 %v2034_v35, %v5550_v8  ;;  %v2036_v42 = vmul.f32 %v5546_v6, %v2034_v35  ;;  %v4804_v6 = vpack.c.bf16 %v3301_v51, %v3300_v50  ;;  %v3326_v35 = vld [vmem:[%s5929_s10 + $0x1d0] sm:$0xff] }
 0x697   :  { %v2027_v43 = vpop.f32.mrb[36].mxu1  ;;  %v2723_v50 = vld [vmem:[%s5933_s13 + $0x10] sm:$0xff] }
 0x698   :  { %v2040_v44 = vrot.slane %v2027_v43, %v5677_v27  ;;  %v4154_v45 = vpop.f32.mrb[37].mxu1  ;;  %v3329_v43 = vld [vmem:[%s5929_s10 + $0x1e8] sm:$0xff] }
 0x699   :  { %v3330_v45 = vld [vmem:[%s5929_s10 + $0x1f0] sm:$0xff] }
 0x69a   :  { %v2041_v46 = vadd.f32 %v2040_v44, %v2035_v41  ;;  %v2042_v47 = vadd.f32 %v2040_v44, %v2036_v42  ;;  %v4855_v41 = vpack.c.bf16 %v3327_v40, %v3326_v35  ;;  %v3328_v42 = vld [vmem:[%s5929_s10 + $0x1e0] sm:$0xff] }
 0x69b   :  { %v4859_v44 = vpack.c.bf16 %v3329_v43, %v3328_v42 }
 0x69c   :  { %v2043_v48 = vmul.f32 0.05, %v2041_v46  ;;  %v2044_v49 = vmul.f32 0.05, %v2042_v47 }
 0x69e   :  { %v5689_v52 = vmax.f32 %v2041_v46, %v2043_v48  ;;  %v5691_v8 = vmax.f32 %v2042_v47, %v2044_v49  ;;  %v3331_v46 = vld [vmem:[%s5929_s10 + $0x1f8] sm:$0xff]  ;;  %v2721_v48 = vld [vmem:[%s5933_s13] sm:$0xff]  ;;  %v2722_v49 = vld [vmem:[%s5933_s13 + $0x8] sm:$0xff] }
 0x69f   :  { %v4863_v47 = vpack.c.bf16 %v3331_v46, %v3330_v45  ;;  %v4871_v51 = vpack.c.bf16 %v2722_v49, %v2721_v48  ;;  %v2889_v46 = vld [vmem:[%s5935_s11] sm:$0x1] }
 0x6a0   :  { %4187 = vmatprep.mubr.f32.mxu0 %v5689_v52  ;;  %4222 = vmatprep.mubr.f32.mxu1 %v5689_v52 }
 0x6a1   :  { %4188 = vmatmul.mubr.f32.vlgmr.msra.gmra.mrb[24].mxu0 %v5691_v8  ;;  %4223 = vmatmul.mubr.f32.vlgmr.msra.gmra.mrb[38].mxu1 %v5691_v8 }
 0x6a2   :  { %4803 = vmatpush3.bf16.msra.mxu1 %v4800_v36  ;;  %4271 = vmatprep.mubr.f32.mxu1 %v5689_v52  ;;  %v4847_v36 = vpack.c.bf16 %v3323_v33, %v3322_v32  ;;  %v4919_v32 = vpack.c.bf16 %v2897_v30, %v2896_v29  ;;  %v2899_v33 = vld [vmem:[%s5934_s14 + $0x18] sm:$0xff] }
 0x6a3   :  { %4805 = vmatprep.subr.bf16.mxu1 %v4804_v6  ;;  %4229 = vmatprep.mubr.msk.f32.mxu0 %vm4962_vm2, %v4963_v5 }
 0x6a6   :  { %4807 = vmatpush3.bf16.msra.mxu1 %v4804_v6  ;;  %v2725_v6 = vld [vmem:[%s5933_s13 + $0x20] sm:$0xff] }
 0x6a7   :  { %4809 = vmatprep.subr.bf16.mxu1 %v4808_v55  ;;  %v4877_v54 = vpack.c.bf16 %v2726_v53, %v2725_v6 }
 0x6aa   :  { %4811 = vmatpush3.bf16.msra.mxu1 %v4808_v55  ;;  %v2727_v55 = vld [vmem:[%s5933_s13 + $0x30] sm:$0xff] }
 0x6ab   :  { %4813 = vmatprep.subr.bf16.mxu1 %v4812_v58  ;;  %v4880_v57 = vpack.c.bf16 %v2728_v56, %v2727_v55 }
 0x6ae   :  { %4815 = vmatpush3.bf16.msra.mxu1 %v4812_v58  ;;  %v2729_v58 = vld [vmem:[%s5933_s13 + $0x40] sm:$0xff] }
 0x6af   :  { %4817 = vmatprep.subr.bf16.mxu1 %v4816_v61  ;;  %v4883_v60 = vpack.c.bf16 %v2730_v59, %v2729_v58 }
 0x6b2   :  { %4819 = vmatpush3.bf16.msra.mxu1 %v4816_v61 }
 0x6b3   :  { %4821 = vmatprep.subr.bf16.mxu1 %v4820_v0 }
 0x6b6   :  { %4823 = vmatpush3.bf16.msra.mxu1 %v4820_v0  ;;  %v3332_v0 = vld [vmem:[%s5932_s9 + $0x18] sm:$0xff] }
 0x6b7   :  { %4825 = vmatprep.subr.bf16.mxu1 %v4824_v3 }
 0x6ba   :  { %4827 = vmatpush3.bf16.msra.mxu1 %v4824_v3  ;;  %v4886_v3 = vpack.c.bf16 %v2732_v2, %v2731_v1 }
 0x6bb   :  { %4829 = vmatprep.subr.bf16.mxu1 %v4828_v9 }
 0x6be   :  { %4831 = vmatpush3.bf16.msra.mxu1 %v4828_v9  ;;  %v4889_v9 = vpack.c.bf16 %v2734_v7, %v2733_v4 }
 0x6bf   :  { %4870 = vmatprep.subr.bf16.mxu1 %v4961_v38 }
 0x6c1   :  { %4272 = vmatmul.mubr.f32.vlgmr.msra.gmra.mrb[40].mxu1 %v5691_v8 }
 0x6c2   :  { %4355 = vmatprep.mubr.msk.f32.mxu1 %vm4962_vm2, %v4963_v5  ;;  %4872 = vmatpush3.bf16.msra.mxu1 %v4871_v51 }
 0x6c3   :  { %4873 = vmatprep.subr.bf16.mxu1 %v4961_v38 }
 0x774   :  { %v4189_v10 = vpop.f32.mrb[24].mxu0  ;;  %v4224_v11 = vpop.f32.mrb[38].mxu1 }
 0x775   :  { %v2129_v12 = vpop.f32.mrb[25].mxu0  ;;  %v2222_v13 = vpop.f32.mrb[39].mxu1 }
 0x776   :  { %v4798_v14 = vpack.c.bf16 %v4189_v10, %v2129_v12  ;;  %v4795_v15 = vpack.c.bf16 %v4224_v11, %v2222_v13  ;;  %v2735_v10 = vld [vmem:[%s5933_s13 + $0x70] sm:$0xff]  ;;  %v2736_v11 = vld [vmem:[%s5933_s13 + $0x78] sm:$0xff] }
 0x777   :  { %v4892_v12 = vpack.c.bf16 %v2736_v11, %v2735_v10 }
 0x778   :  { %4796 = vmatpush3.bf16.msra.mxu0 %v4795_v15 }
 0x779   :  { %4797 = vmatprep.subr.bf16.mxu0 %v4961_v38 }
 0x77b   :  { %4230 = vmatmul.mubr.msk.f32.vlgmr.msra.gmra.mrb[26].mxu0 %vm1884_vm3, %v3295_v16 }
 0x77c   :  { %4799 = vmatpush3.bf16.msra.mxu0 %v4798_v14  ;;  %4236 = vmatprep.mubr.msk.f32.mxu0 %vm4962_vm2, %v4963_v5 }
 0x77d   :  { %4832 = vmatprep.subr.bf16.mxu0 %v4961_v38 }
 0x783   :  { %4237 = vmatmul.mubr.msk.f32.vlgmr.msra.gmra.mrb[26].mxu0 %vm1884_vm3, %v2138_v17 }
 0x784   :  { %4278 = vmatprep.mubr.msk.f32.mxu0 %vm4962_vm2, %v4963_v5 }
 0x794   :  { %v4273_v20 = vpop.f32.mrb[40].mxu1 }
 0x795   :  { %v2462_v21 = vpop.f32.mrb[41].mxu1 }
 0x796   :  { %v4833_v23 = vpack.c.bf16 %v4273_v20, %v2462_v21 }
 0x798   :  { %4834 = vmatpush3.bf16.msra.mxu0 %v4833_v23 }
 0x799   :  { %4836 = vmatprep.subr.bf16.mxu0 %v4835_v22 }
 0x79b   :  { %4279 = vmatmul.mubr.msk.f32.vlgmr.msra.gmra.mrb[26].mxu0 %vm1884_vm3, %v3314_v26 }
 0x79c   :  { %4838 = vmatpush3.bf16.msra.mxu0 %v4835_v22  ;;  %4313 = vmatprep.mubr.f32.mxu0 %v5689_v52  ;;  %v2724_v52 = vld [vmem:[%s5933_s13 + $0x18] sm:$0xff] }
 0x79d   :  { %4840 = vmatprep.subr.bf16.mxu0 %v4839_v28 }
 0x7a0   :  { %4842 = vmatpush3.bf16.msra.mxu0 %v4839_v28 }
 0x7a1   :  { %4844 = vmatprep.subr.bf16.mxu0 %v4843_v31 }
 0x7a4   :  { %4846 = vmatpush3.bf16.msra.mxu0 %v4843_v31  ;;  %v2898_v31 = vld [vmem:[%s5934_s14 + $0x10] sm:$0xff] }
 0x7a5   :  { %4848 = vmatprep.subr.bf16.mxu0 %v4847_v36 }
 0x7a8   :  { %4850 = vmatpush3.bf16.msra.mxu0 %v4847_v36  ;;  %v4922_v36 = vpack.c.bf16 %v2899_v33, %v2898_v31 }
 0x7a9   :  { %4852 = vmatprep.subr.bf16.mxu0 %v4851_v34 }
 0x7ac   :  { %4854 = vmatpush3.bf16.msra.mxu0 %v4851_v34 }
 0x7ad   :  { %4856 = vmatprep.subr.bf16.mxu0 %v4855_v41 }
 0x7b0   :  { %4858 = vmatpush3.bf16.msra.mxu0 %v4855_v41 }
 0x7b1   :  { %4860 = vmatprep.subr.bf16.mxu0 %v4859_v44 }
 0x7b4   :  { %4862 = vmatpush3.bf16.msra.mxu0 %v4859_v44 }
 0x7b5   :  { %4864 = vmatprep.subr.bf16.mxu0 %v4863_v47 }
 0x7b8   :  { %4866 = vmatpush3.bf16.msra.mxu0 %v4863_v47 }
 0x7b9   :  { %4867 = vmatprep.subr.bf16.mxu0 %v4961_v38 }
 0x7bb   :  { %4314 = vmatmul.mubr.f32.vlgmr.msra.gmra.mrb[28].mxu0 %v5691_v8  ;;  %v4874_v8 = vpack.c.bf16 %v2724_v52, %v2723_v50  ;;  %v2893_v50 = vld [vmem:[%s5936_s12] sm:$0x1] }
 0x7bc   :  { %4320 = vmatprep.mubr.msk.f32.mxu0 %vm4962_vm2, %v4963_v5 }
 0x7bd   :  { %4875 = vmatpush3.bf16.msra.mxu1 %v4874_v8 }
 0x7be   :  { %4876 = vmatprep.subr.bf16.mxu1 %v4961_v38 }
 0x7c1   :  { %4878 = vmatpush3.bf16.msra.mxu1 %v4877_v54 }
 0x7c2   :  { %4879 = vmatprep.subr.bf16.mxu1 %v4961_v38 }
 0x7c5   :  { %4881 = vmatpush3.bf16.msra.mxu1 %v4880_v57 }
 0x7c6   :  { %4882 = vmatprep.subr.bf16.mxu1 %v4961_v38 }
 0x7c9   :  { %4884 = vmatpush3.bf16.msra.mxu1 %v4883_v60 }
 0x7ca   :  { %4885 = vmatprep.subr.bf16.mxu1 %v4961_v38 }
 0x7cd   :  { %4887 = vmatpush3.bf16.msra.mxu1 %v4886_v3 }
 0x7ce   :  { %4888 = vmatprep.subr.bf16.mxu1 %v4961_v38 }
 0x7d1   :  { %4890 = vmatpush3.bf16.msra.mxu1 %v4889_v9 }
 0x7d2   :  { %4891 = vmatprep.subr.bf16.mxu1 %v4961_v38 }
 0x7d5   :  { %4893 = vmatpush3.bf16.msra.mxu1 %v4892_v12 }
 0x7d6   :  { %4918 = vmatprep.subr.bf16.mxu1 %v4961_v38 }
 0x88e   :  { %v4315_v61 = vpop.f32.mrb[28].mxu0 }
 0x88f   :  { %v2630_v62 = vpop.f32.mrb[29].mxu0 }
 0x890   :  { %v4868_v63 = vpack.c.bf16 %v4315_v61, %v2630_v62 }
 0x892   :  { %4869 = vmatpush3.bf16.msra.mxu0 %v4868_v63 }
 0x893   :  { %4894 = vmatprep.subr.bf16.mxu0 %v4961_v38 }
 0x895   :  { %4321 = vmatmul.mubr.msk.f32.vlgmr.msra.gmra.mrb[26].mxu0 %vm1884_vm3, %v3332_v0 }
 0x896   :  { %4896 = vmatpush3.bf16.msra.mxu0 %v4871_v51  ;;  %4390 = vmatprep.mubr.msk.f32.mxu0 %vm4962_vm2, %v4963_v5 }
 0x897   :  { %4897 = vmatprep.subr.bf16.mxu0 %v4961_v38 }
 0x89a   :  { %4899 = vmatpush3.bf16.msra.mxu0 %v4874_v8 }
 0x89b   :  { %4900 = vmatprep.subr.bf16.mxu0 %v4961_v38 }
 0x89e   :  { %4902 = vmatpush3.bf16.msra.mxu0 %v4877_v54 }
 0x89f   :  { %4903 = vmatprep.subr.bf16.mxu0 %v4961_v38 }
 0x8a2   :  { %4905 = vmatpush3.bf16.msra.mxu0 %v4880_v57 }
 0x8a3   :  { %4906 = vmatprep.subr.bf16.mxu0 %v4961_v38 }
 0x8a6   :  { %4908 = vmatpush3.bf16.msra.mxu0 %v4883_v60  ;;  %v3062_v60 = vld [vmem:[%s5938_s16] sm:$0x3] }
 0x8a7   :  { %4909 = vmatprep.subr.bf16.mxu0 %v4961_v38 }
 0x8aa   :  { %4911 = vmatpush3.bf16.msra.mxu0 %v4886_v3 }
 0x8ab   :  { %4912 = vmatprep.subr.bf16.mxu0 %v4961_v38 }
 0x8ae   :  { %4914 = vmatpush3.bf16.msra.mxu0 %v4889_v9 }
 0x8af   :  { %4915 = vmatprep.subr.bf16.mxu0 %v4961_v38 }
 0x8b2   :  { %4917 = vmatpush3.bf16.msra.mxu0 %v4892_v12 }
 0x8b3   :  { %4415 = vmatprep.subr.mxu0 %v4963_v5 }
 0x968   :  { %v2710_v13 = vpop.f32.mrb[26].mxu0 }
 0x969   :  { %v2715_v14 = vrot.slane %v2710_v13, 4  ;;  %v2807_v15 = vmul.f32 %v2710_v13, %v2710_v13  ;;  %v4322_v16 = vpop.f32.mrb[27].mxu0 }
 0x96b   :  { %v2716_v17 = vadd.f32 %v2715_v14, %v2710_v13  ;;  %v2808_v18 = vrot.slane %v2807_v15, 4 }
 0x96d   :  { %v2717_v19 = vrot.slane %v2716_v17, 2  ;;  %v2809_v20 = vadd.f32 %v2808_v18, %v2807_v15 }
 0x96f   :  { %v2718_v21 = vadd.f32 %v2717_v19, %v2716_v17  ;;  %v2810_v22 = vrot.slane %v2809_v20, 2 }
 0x971   :  { %v2719_v23 = vrot.slane %v2718_v21, 1  ;;  %v2811_v24 = vadd.f32 %v2810_v22, %v2809_v20 }
 0x973   :  { %v2720_v25 = vadd.f32 %v2719_v23, %v2718_v21  ;;  %v2812_v26 = vrot.slane %v2811_v24, 1 }
 0x975   :  { %4356 = vmatmul.mubr.f32.vlgmr.msra.gmra.mrb[42].mxu1 %v2720_v25  ;;  %v2813_v28 = vadd.f32 %v2812_v26, %v2811_v24 }
 0x976   :  { %4401 = vmatprep.mubr.msk.f32.mxu1 %vm4962_vm2, %v4963_v5  ;;  %4920 = vmatpush3.bf16.msra.mxu1 %v4919_v32 }
 0x977   :  { %4391 = vmatmul.mubr.f32.vlgmr.msra.gmra.mrb[30].mxu0 %v2813_v28  ;;  %4921 = vmatprep.subr.bf16.mxu1 %v4961_v38 }
 0x978   :  { %4417 = vmatprep.mubr.msk.f32.mxu0 %vm4962_vm2, %v4963_v5 }
 0x97a   :  { %4923 = vmatpush3.bf16.msra.mxu1 %v4922_v36 }
 0x97b   :  { %4924 = vmatprep.subr.bf16.mxu1 %v4961_v38 }
 0xa48   :  { %v2803_v37 = vpop.f32.mrb[42].mxu1 }
 0xa49   :  { %v2884_v39 = vmul.f32 0.03125, %v2803_v37  ;;  %v4357_v34 = vpop.f32.mrb[43].mxu1 }
 0xa4a   :  { %v2880_v35 = vpop.f32.mrb[30].mxu0 }
 0xa4b   :  { %v2886_v40 = vmul.f32 %v2884_v39, %v2884_v39  ;;  %v2885_v41 = vmul.f32 0.03125, %v2880_v35  ;;  %v4392_v42 = vpop.f32.mrb[31].mxu0 }
 0xa4d   :  { %v2887_v43 = vsub.f32 %v2885_v41, %v2886_v40 }
 0xa4f   :  { %v2888_v44 = vmax.f32 %v2887_v43, 0.0 }
 0xa51   :  { %v2890_v45 = vadd.f32 1e-05, %v2888_v44 }
 0xa53   :  { %4959 = vrsqrt.f32 %v2890_v45 }
 0xa5d   :  { %v4960_v47 = vpop.eup %4959 }
 0xa5e   :  { %v2892_v48 = vmul.f32 %v4960_v47, %v2889_v46 }
 0xa60   :  { %4402 = vmatmul.mubr.msk.f32.vlgmr.msra.gmra.mrb[44].mxu1 %vm68_vm0, %v2892_v48  ;;  %v2894_v49 = vmul.f32 %v2892_v48, %v2884_v39 }
 0xa61   :  { %4926 = vmatpush3.bf16.msra.mxu1 %v4919_v32  ;;  %4412 = vmatprep.mubr.msk.f32.mxu1 %vm4962_vm2, %v4963_v5 }
 0xa62   :  { %4927 = vmatprep.subr.bf16.mxu1 %v4961_v38  ;;  %v2895_v51 = vsub.f32 %v2893_v50, %v2894_v49  ;;  %v3058_v38 = vld [vmem:[%s5937_s15] sm:$0xff] }
 0xa65   :  { %4929 = vmatpush3.bf16.msra.mxu1 %v4922_v36 }
 0xa68   :  { %4413 = vmatmul.mubr.msk.f32.vlgmr.msra.gmra.mrb[46].mxu1 %vm68_vm0, %v2895_v51 }
 0xb33   :  { %v2969_v52 = vpop.f32.mrb[44].mxu1 }
 0xb34   :  { %v3049_v8 = vrot.slane %v2969_v52, %v5677_v27  ;;  %v4403_v6 = vpop.f32.mrb[45].mxu1 }
 0xb36   :  { %v3050_v53 = vmul.f32 %v3049_v8, %v2710_v13 }
 0xb3b   :  { %v3042_v54 = vpop.f32.mrb[46].mxu1 }
 0xb3c   :  { %v3054_v55 = vrot.slane %v3042_v54, %v5677_v27  ;;  %v4414_v56 = vpop.f32.mrb[47].mxu1 }
 0xb3e   :  { %v3055_v5 = vadd.f32 %v3054_v55, %v3050_v53 }
 0xb40   :  { %v3056_v57 = vmul.f32 0.05, %v3055_v5 }
 0xb42   :  { %v3057_v58 = vmax.f32 %v3055_v5, %v3056_v57 }
 0xb44   :  { %v3059_v59 = vmul.f32 %v3058_v38, %v3057_v58 }
 0xb46   :  { %3060 = vadd.xlane.f32.xlu0 %v3059_v59 }
 0xbd3   :  { %v3061_v61 = vpop.xlane.xlu0 %3060 }
 0xbd4   :  { %4416 = vmatpush3.msra.mxu0 %v3061_v61 }
 0xbd5   :  { %4418 = vmatmul.mubr.msk.f32.vlgmr.msra.gmra.mrb[32].mxu0 %vm3063_vm4, %v3062_v60 }
 0xca8   :  { %v3133_v27 = vpop.f32.mrb[32].mxu0 }
 0xca9   :  { %3138 = vst.msk [vmem:[%s5939_s17] sm:$0x3] %vm3137_vm5, %v3133_v27  ;;  %v4419_v62 = vpop.f32.mrb[33].mxu0 }

</bundles_post_ra>
